<compile_context>
chip_gen: v7x
topology: tpu7x:2x2x1
jax: 0.10.0
libtpu: 0.0.40
codegen_flags: <defaults>
</compile_context>

<pallas_src>
import functools

import jax
import jax.numpy as jnp
from jax import lax
from jax.experimental import pallas as pl
from jax.experimental.pallas import tpu as pltpu


def _ones_band(n, k, p, *, right):
    """(n, n) f32 banded-ones matrix with the conv zero padding folded in.

    left  (right=False): A[r, i] = 1  iff  0 <= i - r + p < k   (use as A @ x)
    right (right=True):  B[j, c] = 1  iff  0 <= j - c + p < k   (use as x @ B)
    """
    rows = lax.broadcasted_iota(jnp.int32, (n, n), 0)
    cols = lax.broadcasted_iota(jnp.int32, (n, n), 1)
    d = (rows - cols + p) if right else (cols - rows + p)
    return jnp.where((d >= 0) & (d < k), jnp.float32(1.0), jnp.float32(0.0))


def _lcc_kernel(i_ref, j_ref, a_ref, b_ref, out_ref, *, b_tile, eps, inv_ws):
    A = a_ref[...]           # (H, H) f32 — constant block index => DMA'd once
    Bm = b_ref[...]          # (W, W) f32

    def box(x):
        # 9x9 zero-padded box sum == A @ x @ B  (two MXU matmuls).
        t = jnp.dot(x, Bm, preferred_element_type=jnp.float32,
                    precision=lax.Precision.HIGHEST)
        return jnp.dot(A, t, preferred_element_type=jnp.float32,
                       precision=lax.Precision.HIGHEST)

    partials = []
    for b in range(b_tile):                 # static unroll; b_tile is small
        Ii = i_ref[b].astype(jnp.float32)   # cast in-kernel (native-dtype DMA)
        Jj = j_ref[b].astype(jnp.float32)

        I_sum = box(Ii)
        J_sum = box(Jj)
        # One-pass forms (algebraically identical to the PyTorch module);
        # clamp variances at 0 against f32 cancellation.
        I_var = jnp.maximum(box(Ii * Ii) - I_sum * I_sum * inv_ws, 0.0)
        J_var = jnp.maximum(box(Jj * Jj) - J_sum * J_sum * inv_ws, 0.0)
        cross = box(Ii * Jj) - I_sum * J_sum * inv_ws

        denom = I_var * J_var + jnp.float32(eps)
        # ~12-bit approximate reciprocal on the EUP slot (documented).
        cc = (cross * cross) * pl.reciprocal(denom, approx=True)
        partials.append(jnp.sum(cc, axis=0, keepdims=True))    # (1, W)

    # Single dense store per grid step; cross-lane sum + finalize happen in
    # the wrapper so the grid axis stays "parallel".
    out_ref[...] = jnp.stack(partials, axis=0)                  # (b_tile, 1, W)


def lcc_pallas(I, J, win=(9, 9), eps=1e-5, b_tile=None,
               vmem_limit_bytes=48 * 1024 * 1024):
    """I, J: (N, 1, H, W) -> scalar float32 (matches LCC.forward)."""
    N, C, H, W = I.shape
    assert C == 1, "LCC conv uses a (1,1,kh,kw) filter -> single-channel input"
    assert win[0] % 2 == 1 and win[1] % 2 == 1, "odd window sizes only"
    assert I.shape == J.shape

    I3 = I[:, 0]            # (N, H, W), native dtype; f32 cast happens in-kernel
    J3 = J[:, 0]

    # Pack several images per grid step, sized against a conservative VMEM
    # budget (2 inputs x 2 pipeline buffers + ~8 f32 intermediate maps).
    if b_tile is None:
        per_image = 12 * H * W * 4
        budget = 32 * 1024 * 1024 - (H * H + W * W) * 4
        b_tile = int(max(1, min(8, budget // max(per_image, 1))))
    b_tile = int(min(b_tile, N))

    num_blocks = (N + b_tile - 1) // b_tile
    Np = num_blocks * b_tile
    if Np != N:
        # Zero images give cc == 0, so padding does not change the sum.
        pad = ((0, Np - N), (0, 0), (0, 0))
        I3 = jnp.pad(I3, pad)
        J3 = jnp.pad(J3, pad)

    A = _ones_band(H, win[0], win[0] // 2, right=False)    # (H, H)
    Bm = _ones_band(W, win[1], win[1] // 2, right=True)    # (W, W)

    kernel = functools.partial(_lcc_kernel, b_tile=b_tile, eps=float(eps),
                               inv_ws=1.0 / float(win[0] * win[1]))

    in_bytes = 2 * Np * H * W * I3.dtype.itemsize
    cost = pl.CostEstimate(
        flops=int(Np * 5 * 2 * H * W * (H + W)),       # 5 box filters x 2 matmuls
        transcendentals=int(Np * H * W),               # per-pixel reciprocal
        bytes_accessed=int(in_bytes + (H * H + W * W) * 4 + Np * W * 4),
    )

    partials = pl.pallas_call(
        kernel,
        out_shape=jax.ShapeDtypeStruct((Np, 1, W), jnp.float32),
        grid=(num_blocks,),
        in_specs=[
            pl.BlockSpec((b_tile, H, W), lambda g: (g, 0, 0)),
            pl.BlockSpec((b_tile, H, W), lambda g: (g, 0, 0)),
            pl.BlockSpec((H, H), lambda g: (0, 0)),   # constant block: no re-DMA
            pl.BlockSpec((W, W), lambda g: (0, 0)),   # constant block: no re-DMA
        ],
        out_specs=pl.BlockSpec((b_tile, 1, W), lambda g: (g, 0, 0)),
        compiler_params=pltpu.CompilerParams(
            dimension_semantics=("parallel",),
            vmem_limit_bytes=int(vmem_limit_bytes)),
        cost_estimate=cost,
    )(I3, J3, A, Bm)

    total = float(N * C * H * W)           # true (unpadded) element count
    return (-jnp.sum(partials) / total + 1.0).astype(jnp.float32)


def lcc_reference(I, J, win=(9, 9), eps=1e-5):
    """Pure-JAX reference using lax conv (mirrors the PyTorch forward)."""
    filt = jnp.ones((1, 1, win[0], win[1]), jnp.float32)
    pad = ((win[0] // 2, win[0] // 2), (win[1] // 2, win[1] // 2))

    def conv(x):
        return lax.conv_general_dilated(
            x, filt, window_strides=(1, 1), padding=pad,
            dimension_numbers=("NCHW", "OIHW", "NCHW"),
            precision=lax.Precision.HIGHEST)

    I = I.astype(jnp.float32)
    J = J.astype(jnp.float32)
    I_sum, J_sum = conv(I), conv(J)
    I2_sum, J2_sum, IJ_sum = conv(I * I), conv(J * J), conv(I * J)
    win_size = win[0] * win[1]
    u_I, u_J = I_sum / win_size, J_sum / win_size
    cross = IJ_sum - u_J * I_sum - u_I * J_sum + u_I * u_J * win_size
    I_var = I2_sum - 2 * u_I * I_sum + u_I * u_I * win_size
    J_var = J2_sum - 2 * u_J * J_sum + u_J * u_J * win_size
    cc = cross * cross / (I_var * J_var + eps)
    return -1.0 * jnp.mean(cc) + 1.0


if __name__ == "__main__":
    # LCC has no learned parameters (the box filter is constant ones).
    key = jax.random.PRNGKey(0)
    k_i, k_j = jax.random.split(key)
    N, C, H, W = 2, 1, 16, 16
    I = jax.random.uniform(k_i, (N, C, H, W), dtype=jnp.float32)
    J = jax.random.uniform(k_j, (N, C, H, W), dtype=jnp.float32)

    lcc = jax.block_until_ready(lcc_pallas(I, J))
    ref = jax.block_until_ready(lcc_reference(I, J))

    assert jnp.isfinite(lcc), "non-finite LCC result"
    assert abs(float(lcc) - float(ref)) < 1e-3, (float(lcc), float(ref))
    print("KERNEL_OK")
</pallas_src>

<mosaic_0001>
module attributes {stable_mosaic.version = 11 : i64} {
  func.func @_lcc_kernel(%arg0: i32, %arg1: memref<2x16x16xf32, #tpu.memory_space<vmem>>, %arg2: memref<2x16x16xf32, #tpu.memory_space<vmem>>, %arg3: memref<16x16xf32, #tpu.memory_space<vmem>>, %arg4: memref<16x16xf32, #tpu.memory_space<vmem>>, %arg5: memref<2x1x16xf32, #tpu.memory_space<vmem>>) attributes {dimension_semantics = [#tpu.dimension_semantics<parallel>], iteration_bounds = array<i64: 1>, scalar_prefetch = 0 : i64, scratch_operands = 0 : i64, tpu.core_type = #tpu.core_type<tc>, window_params = [{transform_indices = @transform_0, window_bounds = array<i64: 2, 16, 16>}, {transform_indices = @transform_1, window_bounds = array<i64: 2, 16, 16>}, {pipeline_mode = #tpu.pipeline_mode<synchronous>, transform_indices = @transform_2, window_bounds = array<i64: 16, 16>}, {pipeline_mode = #tpu.pipeline_mode<synchronous>, transform_indices = @transform_3, window_bounds = array<i64: 16, 16>}, {transform_indices = @transform_4, window_bounds = array<i64: 2, 1, 16>}]} {
    %c0 = arith.constant 0 : index
    %c0_0 = arith.constant 0 : index
    %0 = vector.load %arg3[%c0, %c0_0] : memref<16x16xf32, #tpu.memory_space<vmem>>, vector<16x16xf32>
    %c0_1 = arith.constant 0 : index
    %c0_2 = arith.constant 0 : index
    %1 = vector.load %arg4[%c0_1, %c0_2] : memref<16x16xf32, #tpu.memory_space<vmem>>, vector<16x16xf32>
    %c0_3 = arith.constant 0 : index
    %c0_4 = arith.constant 0 : index
    %c0_5 = arith.constant 0 : index
    %2 = vector.load %arg1[%c0_3, %c0_4, %c0_5] : memref<2x16x16xf32, #tpu.memory_space<vmem>>, vector<1x16x16xf32>
    %3 = vector.shape_cast %2 : vector<1x16x16xf32> to vector<16x16xf32>
    %c0_6 = arith.constant 0 : index
    %c0_7 = arith.constant 0 : index
    %c0_8 = arith.constant 0 : index
    %4 = vector.load %arg2[%c0_6, %c0_7, %c0_8] : memref<2x16x16xf32, #tpu.memory_space<vmem>>, vector<1x16x16xf32>
    %5 = vector.shape_cast %4 : vector<1x16x16xf32> to vector<16x16xf32>
    %cst = arith.constant dense<0.000000e+00> : vector<16x16xf32>
    %6 = tpu.matmul %3, %1, %cst {dimension_numbers = #tpu.dot_dimension_numbers<[1], [0], [0], [1], [0, 0, 1, 1], [], []>, precision = #tpu.contract_precision<fp32>} : vector<16x16xf32>, vector<16x16xf32>, vector<16x16xf32> -> vector<16x16xf32>
    %cst_9 = arith.constant dense<0.000000e+00> : vector<16x16xf32>
    %7 = tpu.matmul %0, %6, %cst_9 {dimension_numbers = #tpu.dot_dimension_numbers<[1], [0], [0], [1], [0, 0, 1, 1], [], []>, precision = #tpu.contract_precision<fp32>} : vector<16x16xf32>, vector<16x16xf32>, vector<16x16xf32> -> vector<16x16xf32>
    %cst_10 = arith.constant dense<0.000000e+00> : vector<16x16xf32>
    %8 = tpu.matmul %5, %1, %cst_10 {dimension_numbers = #tpu.dot_dimension_numbers<[1], [0], [0], [1], [0, 0, 1, 1], [], []>, precision = #tpu.contract_precision<fp32>} : vector<16x16xf32>, vector<16x16xf32>, vector<16x16xf32> -> vector<16x16xf32>
    %cst_11 = arith.constant dense<0.000000e+00> : vector<16x16xf32>
    %9 = tpu.matmul %0, %8, %cst_11 {dimension_numbers = #tpu.dot_dimension_numbers<[1], [0], [0], [1], [0, 0, 1, 1], [], []>, precision = #tpu.contract_precision<fp32>} : vector<16x16xf32>, vector<16x16xf32>, vector<16x16xf32> -> vector<16x16xf32>
    %10 = arith.mulf %3, %3 : vector<16x16xf32>
    %cst_12 = arith.constant dense<0.000000e+00> : vector<16x16xf32>
    %11 = tpu.matmul %10, %1, %cst_12 {dimension_numbers = #tpu.dot_dimension_numbers<[1], [0], [0], [1], [0, 0, 1, 1], [], []>, precision = #tpu.contract_precision<fp32>} : vector<16x16xf32>, vector<16x16xf32>, vector<16x16xf32> -> vector<16x16xf32>
    %cst_13 = arith.constant dense<0.000000e+00> : vector<16x16xf32>
    %12 = tpu.matmul %0, %11, %cst_13 {dimension_numbers = #tpu.dot_dimension_numbers<[1], [0], [0], [1], [0, 0, 1, 1], [], []>, precision = #tpu.contract_precision<fp32>} : vector<16x16xf32>, vector<16x16xf32>, vector<16x16xf32> -> vector<16x16xf32>
    %13 = arith.mulf %7, %7 : vector<16x16xf32>
    %cst_14 = arith.constant 0.0123456791 : f32
    %14 = vector.broadcast %cst_14 : f32 to vector<16x16xf32>
    %15 = arith.mulf %13, %14 : vector<16x16xf32>
    %16 = arith.subf %12, %15 : vector<16x16xf32>
    %cst_15 = arith.constant 0.000000e+00 : f32
    %17 = vector.broadcast %cst_15 : f32 to vector<16x16xf32>
    %18 = arith.maximumf %16, %17 : vector<16x16xf32>
    %19 = arith.mulf %5, %5 : vector<16x16xf32>
    %cst_16 = arith.constant dense<0.000000e+00> : vector<16x16xf32>
    %20 = tpu.matmul %19, %1, %cst_16 {dimension_numbers = #tpu.dot_dimension_numbers<[1], [0], [0], [1], [0, 0, 1, 1], [], []>, precision = #tpu.contract_precision<fp32>} : vector<16x16xf32>, vector<16x16xf32>, vector<16x16xf32> -> vector<16x16xf32>
    %cst_17 = arith.constant dense<0.000000e+00> : vector<16x16xf32>
    %21 = tpu.matmul %0, %20, %cst_17 {dimension_numbers = #tpu.dot_dimension_numbers<[1], [0], [0], [1], [0, 0, 1, 1], [], []>, precision = #tpu.contract_precision<fp32>} : vector<16x16xf32>, vector<16x16xf32>, vector<16x16xf32> -> vector<16x16xf32>
    %22 = arith.mulf %9, %9 : vector<16x16xf32>
    %cst_18 = arith.constant 0.0123456791 : f32
    %23 = vector.broadcast %cst_18 : f32 to vector<16x16xf32>
    %24 = arith.mulf %22, %23 : vector<16x16xf32>
    %25 = arith.subf %21, %24 : vector<16x16xf32>
    %cst_19 = arith.constant 0.000000e+00 : f32
    %26 = vector.broadcast %cst_19 : f32 to vector<16x16xf32>
    %27 = arith.maximumf %25, %26 : vector<16x16xf32>
    %28 = arith.mulf %3, %5 : vector<16x16xf32>
    %cst_20 = arith.constant dense<0.000000e+00> : vector<16x16xf32>
    %29 = tpu.matmul %28, %1, %cst_20 {dimension_numbers = #tpu.dot_dimension_numbers<[1], [0], [0], [1], [0, 0, 1, 1], [], []>, precision = #tpu.contract_precision<fp32>} : vector<16x16xf32>, vector<16x16xf32>, vector<16x16xf32> -> vector<16x16xf32>
    %cst_21 = arith.constant dense<0.000000e+00> : vector<16x16xf32>
    %30 = tpu.matmul %0, %29, %cst_21 {dimension_numbers = #tpu.dot_dimension_numbers<[1], [0], [0], [1], [0, 0, 1, 1], [], []>, precision = #tpu.contract_precision<fp32>} : vector<16x16xf32>, vector<16x16xf32>, vector<16x16xf32> -> vector<16x16xf32>
    %31 = arith.mulf %7, %9 : vector<16x16xf32>
    %cst_22 = arith.constant 0.0123456791 : f32
    %32 = vector.broadcast %cst_22 : f32 to vector<16x16xf32>
    %33 = arith.mulf %31, %32 : vector<16x16xf32>
    %34 = arith.subf %30, %33 : vector<16x16xf32>
    %35 = arith.mulf %18, %27 : vector<16x16xf32>
    %cst_23 = arith.constant 9.99999974E-6 : f32
    %36 = vector.broadcast %cst_23 : f32 to vector<16x16xf32>
    %37 = arith.addf %35, %36 : vector<16x16xf32>
    %38 = arith.mulf %34, %34 : vector<16x16xf32>
    %39 = tpu.reciprocal %37 {approx = true} : vector<16x16xf32> -> vector<16x16xf32>
    %40 = arith.mulf %38, %39 : vector<16x16xf32>
    %cst_24 = arith.constant dense<0.000000e+00> : vector<16xf32>
    %41 = vector.multi_reduction <add>, %40, %cst_24 [0] : vector<16x16xf32> to vector<16xf32>
    %42 = vector.shape_cast %41 : vector<16xf32> to vector<1x16xf32>
    %c1 = arith.constant 1 : index
    %c0_25 = arith.constant 0 : index
    %c0_26 = arith.constant 0 : index
    %43 = vector.load %arg1[%c1, %c0_25, %c0_26] : memref<2x16x16xf32, #tpu.memory_space<vmem>>, vector<1x16x16xf32>
    %44 = vector.shape_cast %43 : vector<1x16x16xf32> to vector<16x16xf32>
    %c1_27 = arith.constant 1 : index
    %c0_28 = arith.constant 0 : index
    %c0_29 = arith.constant 0 : index
    %45 = vector.load %arg2[%c1_27, %c0_28, %c0_29] : memref<2x16x16xf32, #tpu.memory_space<vmem>>, vector<1x16x16xf32>
    %46 = vector.shape_cast %45 : vector<1x16x16xf32> to vector<16x16xf32>
    %cst_30 = arith.constant dense<0.000000e+00> : vector<16x16xf32>
    %47 = tpu.matmul %44, %1, %cst_30 {dimension_numbers = #tpu.dot_dimension_numbers<[1], [0], [0], [1], [0, 0, 1, 1], [], []>, precision = #tpu.contract_precision<fp32>} : vector<16x16xf32>, vector<16x16xf32>, vector<16x16xf32> -> vector<16x16xf32>
    %cst_31 = arith.constant dense<0.000000e+00> : vector<16x16xf32>
    %48 = tpu.matmul %0, %47, %cst_31 {dimension_numbers = #tpu.dot_dimension_numbers<[1], [0], [0], [1], [0, 0, 1, 1], [], []>, precision = #tpu.contract_precision<fp32>} : vector<16x16xf32>, vector<16x16xf32>, vector<16x16xf32> -> vector<16x16xf32>
    %cst_32 = arith.constant dense<0.000000e+00> : vector<16x16xf32>
    %49 = tpu.matmul %46, %1, %cst_32 {dimension_numbers = #tpu.dot_dimension_numbers<[1], [0], [0], [1], [0, 0, 1, 1], [], []>, precision = #tpu.contract_precision<fp32>} : vector<16x16xf32>, vector<16x16xf32>, vector<16x16xf32> -> vector<16x16xf32>
    %cst_33 = arith.constant dense<0.000000e+00> : vector<16x16xf32>
    %50 = tpu.matmul %0, %49, %cst_33 {dimension_numbers = #tpu.dot_dimension_numbers<[1], [0], [0], [1], [0, 0, 1, 1], [], []>, precision = #tpu.contract_precision<fp32>} : vector<16x16xf32>, vector<16x16xf32>, vector<16x16xf32> -> vector<16x16xf32>
    %51 = arith.mulf %44, %44 : vector<16x16xf32>
    %cst_34 = arith.constant dense<0.000000e+00> : vector<16x16xf32>
    %52 = tpu.matmul %51, %1, %cst_34 {dimension_numbers = #tpu.dot_dimension_numbers<[1], [0], [0], [1], [0, 0, 1, 1], [], []>, precision = #tpu.contract_precision<fp32>} : vector<16x16xf32>, vector<16x16xf32>, vector<16x16xf32> -> vector<16x16xf32>
    %cst_35 = arith.constant dense<0.000000e+00> : vector<16x16xf32>
    %53 = tpu.matmul %0, %52, %cst_35 {dimension_numbers = #tpu.dot_dimension_numbers<[1], [0], [0], [1], [0, 0, 1, 1], [], []>, precision = #tpu.contract_precision<fp32>} : vector<16x16xf32>, vector<16x16xf32>, vector<16x16xf32> -> vector<16x16xf32>
    %54 = arith.mulf %48, %48 : vector<16x16xf32>
    %cst_36 = arith.constant 0.0123456791 : f32
    %55 = vector.broadcast %cst_36 : f32 to vector<16x16xf32>
    %56 = arith.mulf %54, %55 : vector<16x16xf32>
    %57 = arith.subf %53, %56 : vector<16x16xf32>
    %cst_37 = arith.constant 0.000000e+00 : f32
    %58 = vector.broadcast %cst_37 : f32 to vector<16x16xf32>
    %59 = arith.maximumf %57, %58 : vector<16x16xf32>
    %60 = arith.mulf %46, %46 : vector<16x16xf32>
    %cst_38 = arith.constant dense<0.000000e+00> : vector<16x16xf32>
    %61 = tpu.matmul %60, %1, %cst_38 {dimension_numbers = #tpu.dot_dimension_numbers<[1], [0], [0], [1], [0, 0, 1, 1], [], []>, precision = #tpu.contract_precision<fp32>} : vector<16x16xf32>, vector<16x16xf32>, vector<16x16xf32> -> vector<16x16xf32>
    %cst_39 = arith.constant dense<0.000000e+00> : vector<16x16xf32>
    %62 = tpu.matmul %0, %61, %cst_39 {dimension_numbers = #tpu.dot_dimension_numbers<[1], [0], [0], [1], [0, 0, 1, 1], [], []>, precision = #tpu.contract_precision<fp32>} : vector<16x16xf32>, vector<16x16xf32>, vector<16x16xf32> -> vector<16x16xf32>
    %63 = arith.mulf %50, %50 : vector<16x16xf32>
    %cst_40 = arith.constant 0.0123456791 : f32
    %64 = vector.broadcast %cst_40 : f32 to vector<16x16xf32>
    %65 = arith.mulf %63, %64 : vector<16x16xf32>
    %66 = arith.subf %62, %65 : vector<16x16xf32>
    %cst_41 = arith.constant 0.000000e+00 : f32
    %67 = vector.broadcast %cst_41 : f32 to vector<16x16xf32>
    %68 = arith.maximumf %66, %67 : vector<16x16xf32>
    %69 = arith.mulf %44, %46 : vector<16x16xf32>
    %cst_42 = arith.constant dense<0.000000e+00> : vector<16x16xf32>
    %70 = tpu.matmul %69, %1, %cst_42 {dimension_numbers = #tpu.dot_dimension_numbers<[1], [0], [0], [1], [0, 0, 1, 1], [], []>, precision = #tpu.contract_precision<fp32>} : vector<16x16xf32>, vector<16x16xf32>, vector<16x16xf32> -> vector<16x16xf32>
    %cst_43 = arith.constant dense<0.000000e+00> : vector<16x16xf32>
    %71 = tpu.matmul %0, %70, %cst_43 {dimension_numbers = #tpu.dot_dimension_numbers<[1], [0], [0], [1], [0, 0, 1, 1], [], []>, precision = #tpu.contract_precision<fp32>} : vector<16x16xf32>, vector<16x16xf32>, vector<16x16xf32> -> vector<16x16xf32>
    %72 = arith.mulf %48, %50 : vector<16x16xf32>
    %cst_44 = arith.constant 0.0123456791 : f32
    %73 = vector.broadcast %cst_44 : f32 to vector<16x16xf32>
    %74 = arith.mulf %72, %73 : vector<16x16xf32>
    %75 = arith.subf %71, %74 : vector<16x16xf32>
    %76 = arith.mulf %59, %68 : vector<16x16xf32>
    %cst_45 = arith.constant 9.99999974E-6 : f32
    %77 = vector.broadcast %cst_45 : f32 to vector<16x16xf32>
    %78 = arith.addf %76, %77 : vector<16x16xf32>
    %79 = arith.mulf %75, %75 : vector<16x16xf32>
    %80 = tpu.reciprocal %78 {approx = true} : vector<16x16xf32> -> vector<16x16xf32>
    %81 = arith.mulf %79, %80 : vector<16x16xf32>
    %cst_46 = arith.constant dense<0.000000e+00> : vector<16xf32>
    %82 = vector.multi_reduction <add>, %81, %cst_46 [0] : vector<16x16xf32> to vector<16xf32>
    %83 = vector.shape_cast %82 : vector<16xf32> to vector<1x16xf32>
    %84 = vector.shape_cast %42 : vector<1x16xf32> to vector<1x1x16xf32>
    %85 = vector.shape_cast %83 : vector<1x16xf32> to vector<1x1x16xf32>
    %86 = tpu.concatenate %84, %85 in 0 : vector<1x1x16xf32>, vector<1x1x16xf32> -> vector<2x1x16xf32>
    %c0_47 = arith.constant 0 : index
    %c0_48 = arith.constant 0 : index
    %c0_49 = arith.constant 0 : index
    %87 = vector.load %arg5[%c0_47, %c0_48, %c0_49] : memref<2x1x16xf32, #tpu.memory_space<vmem>>, vector<2x1x16xf32>
    tpu.vector_store %arg5[%c0_47, %c0_48, %c0_49], %86 {strides = array<i32>} : memref<2x1x16xf32, #tpu.memory_space<vmem>>, vector<2x1x16xf32>,
    return
  }
  func.func @transform_0(%arg0: i32) -> (i32, i32, i32) {
    %c0_i32 = arith.constant 0 : i32
    %c0_i32_0 = arith.constant 0 : i32
    %c0_i32_1 = arith.constant 0 : i32
    return %arg0, %c0_i32, %c0_i32_0 : i32, i32, i32
  }
  func.func @transform_1(%arg0: i32) -> (i32, i32, i32) {
    %c0_i32 = arith.constant 0 : i32
    %c0_i32_0 = arith.constant 0 : i32
    %c0_i32_1 = arith.constant 0 : i32
    return %arg0, %c0_i32, %c0_i32_0 : i32, i32, i32
  }
  func.func @transform_2(%arg0: i32) -> (i32, i32) {
    %c0_i32 = arith.constant 0 : i32
    %c0_i32_0 = arith.constant 0 : i32
    %c0_i32_1 = arith.constant 0 : i32
    return %c0_i32, %c0_i32_0 : i32, i32
  }
  func.func @transform_3(%arg0: i32) -> (i32, i32) {
    %c0_i32 = arith.constant 0 : i32
    %c0_i32_0 = arith.constant 0 : i32
    %c0_i32_1 = arith.constant 0 : i32
    return %c0_i32, %c0_i32_0 : i32, i32
  }
  func.func @transform_4(%arg0: i32) -> (i32, i32, i32) {
    %c0_i32 = arith.constant 0 : i32
    %c0_i32_0 = arith.constant 0 : i32
    %c0_i32_1 = arith.constant 0 : i32
    return %arg0, %c0_i32, %c0_i32_0 : i32, i32, i32
  }
}

</mosaic_0001>

<bundles_post_ra>
// kernel: tpu_custom_call.1
= control target key start
LH: loop header
LB: loop body
LE: loop exit
PB: predicated region body
PF: predicated region fallthrough
CT: control target
= control target key end

     0   :  { %9 = vsyncpa [#allocation3], 0  ;;  %s13045_s0 = inlined_call_operand.hbm [shape: f32[2,16,16], index: 0, kind: input, shape index: {}]   ;;  %s13046_s1 = inlined_call_operand.hbm [shape: f32[2,16,16], index: 1, kind: input, shape index: {}]   ;;  %s13047_s2 = inlined_call_operand.hbm [shape: f32[16,16], index: 2, kind: input, shape index: {}]   ;;  %s13048_s3 = inlined_call_operand.hbm [shape: f32[16,16], index: 3, kind: input, shape index: {}]   ;;  %s13049_s4 = inlined_call_operand.hbm [shape: f32[2,1,16], index: 4, kind: output, shape index: {}]  }
   0x1   :  { %10 = vsyncpa [#allocation6], 0 }
   0x2   :  { %11 = vsyncpa [#allocation9], 0 }
   0x3   :  { %12 = vsyncpa [#allocation4], 0  ;;  %s12445_s15 = smov [#allocation5]   ;;  %s12446_s17 = smov [#allocation2]  }
   0x4   :  { %s30_s16 = sshll.u32 %s12445_s15, 4  ;;  %s18_s18 = sshll.u32 %s12446_s17, 4  ;;  %s31_s16 = int_to_ptr.vmem [resolvable:$true] %s30_s16  ;;  %s12479_s18 = int_to_ptr.vmem [resolvable:$true] %s18_s18 }
   0x5   :  { %s12327_s21 = scalar_lea.hbm %s13046_s1, 512 }
   0x6   :  { %p12328_p0 = scmp.ne.s32.totalorder %s13046_s1, %s12327_s21  ;;  %p12331_p1 = scmp.lt.u32.totalorder %s12327_s21, %s13046_s1 }
   0x8   :  { %p12333_p2 = pnand %p12331_p1, %p12328_p0 }
   0xa   :  { %12336 = shalt.err (!%p12333_p2)
}
   0xb   :  { %s12337_s26 = scalar_lea.vmem %s31_s16, 512  ;;  %p12342_p4 = scmp.lt.s32.totalorder %s31_s16, %s31_s16 }
   0xc   :  { %p12338_p3 = scmp.ne.s32.totalorder %s31_s16, %s12337_s26  ;;  %p12343_p5 = scmp.lt.s32.totalorder %s12337_s26, %s12337_s26 }
   0xe   :  { %p12344_p6 = por %p12343_p5, %p12342_p4 }
  0x10   :  { %p12345_p7 = pnand %p12344_p6, %p12338_p3 }
  0x12   :  { %12348 = shalt.err (!%p12345_p7)
}
  0x13   :  { %s12447_s27 = smov 128   ;;  %s12448_s28 = smov 8  }
  0x14   :  { %36 = dma.hbm_to_vmem [thread:$0]  %s13046_s1, 512, %s31_s16, [#allocation6], %s12447_s27, %s12447_s27, %s12448_s28  }
  0x15   :  { %s12349_s7 = scalar_lea.hbm %s13045_s0, 512 }
  0x16   :  { %p12350_p8 = scmp.ne.s32.totalorder %s13045_s0, %s12349_s7  ;;  %p12353_p9 = scmp.lt.u32.totalorder %s12349_s7, %s13045_s0 }
  0x18   :  { %p12355_p10 = pnand %p12353_p9, %p12350_p8 }
  0x1a   :  { %12358 = shalt.err (!%p12355_p10)
}
  0x1b   :  { %s12359_s12 = scalar_lea.vmem %s12479_s18, 512  ;;  %p12364_p12 = scmp.lt.s32.totalorder %s12479_s18, %s12479_s18 }
  0x1c   :  { %p12360_p11 = scmp.ne.s32.totalorder %s12479_s18, %s12359_s12  ;;  %p12365_p13 = scmp.lt.s32.totalorder %s12359_s12, %s12359_s12 }
  0x1e   :  { %p12366_p0 = por %p12365_p13, %p12364_p12 }
  0x20   :  { %p12367_p1 = pnand %p12366_p0, %p12360_p11 }
  0x22   :  { %12370 = shalt.err (!%p12367_p1)
}
  0x23   :  { %24 = dma.hbm_to_vmem [thread:$0]  %s13045_s0, 512, %s12479_s18, [#allocation3], %s12447_s27, %s12447_s27, %s12448_s28  }
  0x24   :  { %s12449_s14 = smov [#allocation7]   ;;  %s12450_s16 = smov [#allocation8]  }
  0x25   :  { %s42_s15 = sshll.u32 %s12449_s14, 4  ;;  %s54_s17 = sshll.u32 %s12450_s16, 4  ;;  %s43_s15 = int_to_ptr.vmem [resolvable:$true] %s42_s15  ;;  %s12516_s17 = int_to_ptr.vmem [resolvable:$true] %s54_s17 }
  0x26   :  { %s12371_s21 = scalar_lea.hbm %s13047_s2, 256 }
  0x27   :  { %p12372_p2 = scmp.ne.s32.totalorder %s13047_s2, %s12371_s21  ;;  %p12375_p3 = scmp.lt.u32.totalorder %s12371_s21, %s13047_s2 }
  0x29   :  { %p12377_p4 = pnand %p12375_p3, %p12372_p2 }
  0x2b   :  { %12380 = shalt.err (!%p12377_p4)
}
  0x2c   :  { %s12381_s0 = scalar_lea.vmem %s43_s15, 256  ;;  %p12386_p6 = scmp.lt.s32.totalorder %s43_s15, %s43_s15 }
  0x2d   :  { %p12382_p5 = scmp.ne.s32.totalorder %s43_s15, %s12381_s0  ;;  %p12387_p7 = scmp.lt.s32.totalorder %s12381_s0, %s12381_s0 }
  0x2f   :  { %p12388_p8 = por %p12387_p7, %p12386_p6 }
  0x31   :  { %p12389_p9 = pnand %p12388_p8, %p12382_p5 }
  0x33   :  { %12392 = shalt.err (!%p12389_p9)
}
  0x34   :  { %48 = dma.hbm_to_vmem [thread:$0]  %s13047_s2, 256, %s43_s15, [#allocation6], %s12447_s27, %s12447_s27, %s12448_s28  }
  0x35   :  { %s12393_s5 = scalar_lea.hbm %s13048_s3, 256 }
  0x36   :  { %p12394_p10 = scmp.ne.s32.totalorder %s13048_s3, %s12393_s5  ;;  %p12397_p11 = scmp.lt.u32.totalorder %s12393_s5, %s13048_s3 }
  0x38   :  { %p12399_p12 = pnand %p12397_p11, %p12394_p10 }
  0x3a   :  { %12402 = shalt.err (!%p12399_p12)
}
  0x3b   :  { %s12403_s10 = scalar_lea.vmem %s12516_s17, 256  ;;  %p12408_p0 = scmp.lt.s32.totalorder %s12516_s17, %s12516_s17 }
  0x3c   :  { %p12404_p13 = scmp.ne.s32.totalorder %s12516_s17, %s12403_s10  ;;  %p12409_p1 = scmp.lt.s32.totalorder %s12403_s10, %s12403_s10 }
  0x3e   :  { %p12410_p2 = por %p12409_p1, %p12408_p0 }
  0x40   :  { %p12411_p3 = pnand %p12410_p2, %p12404_p13 }
  0x42   :  { %12414 = shalt.err (!%p12411_p3)
}
  0x43   :  { %60 = dma.hbm_to_vmem [thread:$0]  %s13048_s3, 256, %s12516_s17, [#allocation9], %s12447_s27, %s12447_s27, %s12448_s28  }
  0x44   :  { %12437 = dma.done.wait [#allocation3], 512  }
  0x45   :  { %12438 = vsyncadd [#allocation3], 4294966784 }
  0x46   :  { %12439 = dma.done.wait [#allocation6], 768  }
  0x47   :  { %12440 = vsyncadd [#allocation6], 4294966528 }
  0x48   :  { %12441 = dma.done.wait [#allocation9], 256  }
  0x49   :  { %12442 = vsyncadd [#allocation9], 4294967040  ;;  %vm81_vm0 = vcmask 130048   ;;  %v75_v0 = vld [vmem:[#allocation8] sm:$0xff]  ;;  %v76_v1 = vld [vmem:[#allocation8 + $0x8] sm:$0xff]  ;;  %vm10288_vm1 = vcmask 122880  }
  0x4a   :  { %v12553_v2 = vld [vmem:[#allocation2] sm:$0xff]  ;;  %v89_v3 = vand.u32 4294901760, %v75_v0  ;;  %v92_v4 = vand.u32 4294901760, %v76_v1  ;;  %v12559_v7 = vld [vmem:[#allocation2 + $0x8] sm:$0xff]  ;;  %s12451_s3 = smov [#allocation10]  }
  0x4b   :  { %v12555_v5 = vld [vmem:[#allocation5] sm:$0xff]  ;;  %v83_v6 = vsel %vm81_vm0, %v12553_v2, 0  ;;  %v12565_v10 = vld [vmem:[#allocation5 + $0x8] sm:$0xff]  ;;  %v86_v11 = vsel %vm81_vm0, %v12559_v7, 0  ;;  %v2108_v46 = vmul.f32 %v12553_v2, %v12553_v2  ;;  %v2109_v47 = vmul.f32 %v12559_v7, %v12559_v7  ;;  %s10296_s27 = sshll.u32 %s12451_s3, 4  ;;  %s10297_s27 = int_to_ptr.vmem [resolvable:$true] %s10296_s27 }
  0x4c   :  { %v155_v8 = vand.u32 4294901760, %v83_v6  ;;  %v12563_v9 = vmul.f32 %v12555_v5, %v12553_v2  ;;  %v12569_v12 = vpack.c.bf16 %v92_v4, %v89_v3  ;;  %v165_v13 = vand.u32 4294901760, %v86_v11  ;;  %s12415_s28 = scalar_lea.vmem %s10297_s27, 32  ;;  %p12420_p5 = scmp.lt.s32.totalorder %s10297_s27, %s10297_s27 }
  0x4d   :  { %v12573_v14 = vmul.f32 %v12565_v10, %v12559_v7  ;;  %v177_v15 = vsub.f32 %v75_v0, %v89_v3  ;;  %v184_v17 = vsub.f32 %v76_v1, %v92_v4  ;;  %v1099_v34 = vsel %vm81_vm0, %v12555_v5, 0  ;;  %p12416_p4 = scmp.ne.s32.totalorder %s10297_s27, %s12415_s28  ;;  %p12421_p6 = scmp.lt.s32.totalorder %s12415_s28, %s12415_s28 }
  0x4e   :  { %v156_v16 = vsub.f32 %v83_v6, %v155_v8  ;;  %11631 = vmatprep.subr.bf16.mxu0 %v12569_v12  ;;  %v166_v18 = vsub.f32 %v86_v11, %v165_v13  ;;  %v1171_v35 = vand.u32 4294901760, %v1099_v34  ;;  %v1102_v36 = vsel %vm81_vm0, %v12565_v10, 0  ;;  %v73_v6 = vld [vmem:[#allocation7] sm:$0xff] }
  0x4f   :  { %v178_v19 = vand.u32 4294901760, %v177_v15  ;;  %11633 = vmatpush3.bf16.msra.mxu0 %v12569_v12  ;;  %v185_v21 = vand.u32 4294901760, %v184_v17  ;;  %v12579_v32 = vpack.c.bf16 %v184_v17, %v177_v15  ;;  %v1181_v37 = vand.u32 4294901760, %v1102_v36  ;;  %p12422_p7 = por %p12421_p6, %p12420_p5 }
  0x50   :  { %v157_v20 = vand.u32 4294901760, %v156_v16  ;;  %v167_v22 = vand.u32 4294901760, %v166_v18  ;;  %v1172_v38 = vsub.f32 %v1099_v34, %v1171_v35  ;;  %v2111_v48 = vsel %vm81_vm0, %v2108_v46, 0 }
  0x51   :  { %v179_v23 = vsub.f32 %v177_v15, %v178_v19  ;;  %v186_v25 = vsub.f32 %v184_v17, %v185_v21  ;;  %v12586_v33 = vpack.c.bf16 %v185_v21, %v178_v19  ;;  %v1182_v39 = vsub.f32 %v1102_v36, %v1181_v37  ;;  %p12423_p8 = pnand %p12422_p7, %p12416_p4 }
  0x52   :  { %v158_v24 = vsub.f32 %v156_v16, %v157_v20  ;;  %v168_v26 = vsub.f32 %v166_v18, %v167_v22  ;;  %v1173_v40 = vand.u32 4294901760, %v1172_v38  ;;  %v2183_v49 = vand.u32 4294901760, %v2111_v48 }
  0x53   :  { %v180_v27 = vand.u32 4294901760, %v179_v23  ;;  %v187_v29 = vand.u32 4294901760, %v186_v25  ;;  %v1183_v41 = vand.u32 4294901760, %v1182_v39  ;;  %v2114_v50 = vsel %vm81_vm0, %v2109_v47, 0  ;;  %v74_v47 = vld [vmem:[#allocation7 + $0x8] sm:$0xff] }
  0x54   :  { %v159_v28 = vand.u32 4294901760, %v158_v24  ;;  %v169_v30 = vand.u32 4294901760, %v168_v26  ;;  %v1174_v42 = vsub.f32 %v1172_v38, %v1173_v40  ;;  %v2193_v51 = vand.u32 4294901760, %v2114_v50 }
  0x55   :  { %v12577_v31 = vpack.c.bf16 %v187_v29, %v180_v27  ;;  %v1184_v43 = vsub.f32 %v1182_v39, %v1183_v41  ;;  %v2184_v52 = vsub.f32 %v2111_v48, %v2183_v49  ;;  %v3128_v60 = vmul.f32 %v12555_v5, %v12555_v5  ;;  %v12694_v48 = vld [vmem:[#allocation5 + $0x10] sm:$0xff] }
  0x56   :  { %10794 = vmatprep.mubr.f32.mxu0 %v159_v28  ;;  %v1175_v44 = vand.u32 4294901760, %v1174_v42  ;;  %v2194_v53 = vsub.f32 %v2114_v50, %v2193_v51  ;;  %v3129_v61 = vmul.f32 %v12565_v10, %v12565_v10  ;;  %v12699_v50 = vld [vmem:[#allocation5 + $0x18] sm:$0xff] }
  0x57   :  { %10795 = vmatmul.mubr.f32.vlgmr.msra.gmra.mrb[0].mxu0 %v169_v30  ;;  %11635 = vmatprep.subr.bf16.mxu0 %v12577_v31  ;;  %v1185_v45 = vand.u32 4294901760, %v1184_v43  ;;  %v2185_v54 = vand.u32 4294901760, %v2184_v52  ;;  %v3131_v62 = vsel %vm81_vm0, %v3128_v60, 0  ;;  %v12670_v30 = vld [vmem:[#allocation2 + $0x10] sm:$0xff] }
  0x58   :  { %10801 = vmatprep.mubr.f32.mxu0 %v155_v8  ;;  %11637 = vmatpush3.bf16.msra.mxu0 %v12577_v31  ;;  %v2195_v55 = vand.u32 4294901760, %v2194_v53  ;;  %v3203_v63 = vand.u32 4294901760, %v3131_v62  ;;  %v3134_v0 = vsel %vm81_vm0, %v3129_v61, 0  ;;  %v5192_v34 = vsel %vm81_vm0, %v12670_v30, 0 }
  0x59   :  { %11639 = vmatprep.subr.bf16.mxu0 %v12579_v32  ;;  %v2186_v56 = vsub.f32 %v2184_v52, %v2185_v54  ;;  %v3213_v1 = vand.u32 4294901760, %v3134_v0  ;;  %v5264_v36 = vand.u32 4294901760, %v5192_v34 }
  0x5a   :  { %v2196_v57 = vsub.f32 %v2194_v53, %v2195_v55  ;;  %v3204_v2 = vsub.f32 %v3131_v62, %v3203_v63 }
  0x5b   :  { %v2187_v58 = vand.u32 4294901760, %v2186_v56  ;;  %v3214_v3 = vsub.f32 %v3134_v0, %v3213_v1 }
  0x5c   :  { %v2197_v59 = vand.u32 4294901760, %v2196_v57  ;;  %v3205_v4 = vand.u32 4294901760, %v3204_v2 }
  0x5d   :  { %v3215_v5 = vand.u32 4294901760, %v3214_v3 }
  0x5e   :  { %v3206_v7 = vsub.f32 %v3204_v2, %v3205_v4 }
  0x5f   :  { %10802 = vmatmul.mubr.f32.vlgmr.msra.gmra.mrb[0].mxu0 %v165_v13  ;;  %v3216_v11 = vsub.f32 %v3214_v3, %v3215_v5 }
  0x60   :  { %11641 = vmatpush3.bf16.msra.mxu0 %v12579_v32  ;;  %10808 = vmatprep.mubr.f32.mxu0 %v156_v16  ;;  %v3207_v15 = vand.u32 4294901760, %v3206_v7 }
  0x61   :  { %11643 = vmatprep.subr.bf16.mxu0 %v12569_v12  ;;  %v3217_v17 = vand.u32 4294901760, %v3216_v11 }
  0x67   :  { %10809 = vmatmul.mubr.f32.vlgmr.msra.gmra.mrb[0].mxu0 %v166_v18 }
  0x68   :  { %11645 = vmatpush3.bf16.msra.mxu0 %v12569_v12  ;;  %10815 = vmatprep.mubr.f32.mxu0 %v157_v20  ;;  %v4151_v20 = vsel %vm81_vm0, %v12563_v9, 0 }
  0x69   :  { %11647 = vmatprep.subr.bf16.mxu0 %v12586_v33  ;;  %v4223_v21 = vand.u32 4294901760, %v4151_v20 }
  0x6b   :  { %v4224_v24 = vsub.f32 %v4151_v20, %v4223_v21 }
  0x6d   :  { %v4225_v26 = vand.u32 4294901760, %v4224_v24 }
  0x6f   :  { %10816 = vmatmul.mubr.f32.vlgmr.msra.gmra.mrb[0].mxu0 %v167_v22  ;;  %v4154_v22 = vsel %vm81_vm0, %v12573_v14, 0  ;;  %v4226_v9 = vsub.f32 %v4224_v24, %v4225_v26 }
  0x70   :  { %11649 = vmatpush3.bf16.msra.mxu0 %v12586_v33  ;;  %10822 = vmatprep.mubr.f32.mxu0 %v155_v8  ;;  %v4233_v23 = vand.u32 4294901760, %v4154_v22 }
  0x71   :  { %11651 = vmatprep.subr.bf16.mxu0 %v12569_v12  ;;  %v4227_v14 = vand.u32 4294901760, %v4226_v9 }
  0x72   :  { %v4234_v25 = vsub.f32 %v4154_v22, %v4233_v23 }
  0x74   :  { %v4235_v27 = vand.u32 4294901760, %v4234_v25 }
  0x76   :  { %v4236_v28 = vsub.f32 %v4234_v25, %v4235_v27 }
  0x77   :  { %10823 = vmatmul.mubr.f32.vlgmr.msra.gmra.mrb[0].mxu0 %v165_v13 }
  0x78   :  { %11653 = vmatpush3.bf16.msra.mxu0 %v12569_v12  ;;  %10829 = vmatprep.mubr.f32.mxu0 %v155_v8  ;;  %v591_v8 = vsel %vm81_vm0, %v73_v6, 0  ;;  %v4237_v29 = vand.u32 4294901760, %v4236_v28 }
  0x79   :  { %11679 = vmatprep.subr.bf16.mxu0 %v12569_v12  ;;  %v12635_v10 = vand.u32 4294901760, %v591_v8 }
  0x7f   :  { %10830 = vmatmul.mubr.f32.vlgmr.msra.gmra.mrb[0].mxu0 %v165_v13  ;;  %v12638_v13 = vsub.f32 %v591_v8, %v12635_v10 }
  0x80   :  { %11681 = vmatpush3.bf16.msra.mxu0 %v12569_v12  ;;  %10878 = vmatprep.mubr.f32.mxu0 %v1175_v44 }
  0x81   :  { %11683 = vmatprep.subr.bf16.mxu0 %v12577_v31  ;;  %v12641_v16 = vand.u32 4294901760, %v12638_v13 }
  0x83   :  { %10879 = vmatmul.mubr.f32.vlgmr.msra.gmra.mrb[2].mxu0 %v1185_v45  ;;  %v666_v18 = vsub.f32 %v12638_v13, %v12641_v16 }
  0x84   :  { %11685 = vmatpush3.bf16.msra.mxu0 %v12577_v31  ;;  %10885 = vmatprep.mubr.f32.mxu0 %v1171_v35 }
  0x85   :  { %11687 = vmatprep.subr.bf16.mxu0 %v12579_v32  ;;  %v12647_v19 = vand.u32 4294901760, %v666_v18 }
  0x87   :  { %10836 = vmatprep.mubr.f32.mxu1 %v12647_v19 }
  0x8b   :  { %10886 = vmatmul.mubr.f32.vlgmr.msra.gmra.mrb[2].mxu0 %v1181_v37 }
  0x8c   :  { %11689 = vmatpush3.bf16.msra.mxu0 %v12579_v32  ;;  %10892 = vmatprep.mubr.f32.mxu0 %v1172_v38 }
  0x8d   :  { %11691 = vmatprep.subr.bf16.mxu0 %v12569_v12 }
  0x93   :  { %10893 = vmatmul.mubr.f32.vlgmr.msra.gmra.mrb[2].mxu0 %v1182_v39  ;;  %v5265_v39 = vsub.f32 %v5192_v34, %v5264_v36 }
  0x94   :  { %11693 = vmatpush3.bf16.msra.mxu0 %v12569_v12  ;;  %10899 = vmatprep.mubr.f32.mxu0 %v1173_v40 }
  0x95   :  { %11695 = vmatprep.subr.bf16.mxu0 %v12586_v33 }
  0x9b   :  { %10900 = vmatmul.mubr.f32.vlgmr.msra.gmra.mrb[2].mxu0 %v1183_v41  ;;  %v5266_v41 = vand.u32 4294901760, %v5265_v39 }
  0x9c   :  { %11697 = vmatpush3.bf16.msra.mxu0 %v12586_v33  ;;  %10906 = vmatprep.mubr.f32.mxu0 %v1171_v35 }
  0x9d   :  { %11699 = vmatprep.subr.bf16.mxu0 %v12569_v12  ;;  %v5267_v43 = vsub.f32 %v5265_v39, %v5266_v41 }
  0x9f   :  { %v5268_v45 = vand.u32 4294901760, %v5267_v43 }
  0xa3   :  { %10907 = vmatmul.mubr.f32.vlgmr.msra.gmra.mrb[2].mxu0 %v1181_v37 }
  0xa4   :  { %11701 = vmatpush3.bf16.msra.mxu0 %v12569_v12  ;;  %10913 = vmatprep.mubr.f32.mxu0 %v1171_v35  ;;  %v12676_v35 = vld [vmem:[#allocation2 + $0x18] sm:$0xff] }
  0xa5   :  { %11727 = vmatprep.subr.bf16.mxu0 %v12569_v12  ;;  %v7212_v9 = vmul.f32 %v12676_v35, %v12676_v35 }
  0xab   :  { %10914 = vmatmul.mubr.f32.vlgmr.msra.gmra.mrb[2].mxu0 %v1181_v37  ;;  %v5195_v37 = vsel %vm81_vm0, %v12676_v35, 0 }
  0xac   :  { %11729 = vmatpush3.bf16.msra.mxu0 %v12569_v12  ;;  %10962 = vmatprep.mubr.f32.mxu0 %v2187_v58  ;;  %v12680_v38 = vand.u32 4294901760, %v5195_v37 }
  0xad   :  { %11731 = vmatprep.subr.bf16.mxu0 %v12577_v31 }
  0xae   :  { %v5275_v40 = vsub.f32 %v5195_v37, %v12680_v38 }
  0xaf   :  { %10963 = vmatmul.mubr.f32.vlgmr.msra.gmra.mrb[4].mxu0 %v2197_v59 }
  0xb0   :  { %11733 = vmatpush3.bf16.msra.mxu0 %v12577_v31  ;;  %10969 = vmatprep.mubr.f32.mxu0 %v2183_v49  ;;  %v5276_v42 = vand.u32 4294901760, %v5275_v40 }
  0xb1   :  { %11735 = vmatprep.subr.bf16.mxu0 %v12579_v32 }
  0xb2   :  { %v5277_v44 = vsub.f32 %v5275_v40, %v5276_v42 }
  0xb4   :  { %v5278_v46 = vand.u32 4294901760, %v5277_v44 }
  0xb7   :  { %10970 = vmatmul.mubr.f32.vlgmr.msra.gmra.mrb[4].mxu0 %v2193_v51 }
  0xb8   :  { %11737 = vmatpush3.bf16.msra.mxu0 %v12579_v32  ;;  %10976 = vmatprep.mubr.f32.mxu0 %v2184_v52 }
  0xb9   :  { %11739 = vmatprep.subr.bf16.mxu0 %v12569_v12 }
  0xbf   :  { %10977 = vmatmul.mubr.f32.vlgmr.msra.gmra.mrb[4].mxu0 %v2194_v53  ;;  %v6205_v53 = vsel %vm81_vm0, %v12699_v50, 0 }
  0xc0   :  { %11741 = vmatpush3.bf16.msra.mxu0 %v12569_v12  ;;  %10983 = vmatprep.mubr.f32.mxu0 %v2185_v54 }
  0xc1   :  { %11743 = vmatprep.subr.bf16.mxu0 %v12586_v33 }
  0xc7   :  { %10984 = vmatmul.mubr.f32.vlgmr.msra.gmra.mrb[4].mxu0 %v2195_v55  ;;  %v12709_v55 = vand.u32 4294901760, %v6205_v53 }
  0xc8   :  { %11745 = vmatpush3.bf16.msra.mxu0 %v12586_v33  ;;  %10990 = vmatprep.mubr.f32.mxu0 %v2183_v49 }
  0xc9   :  { %11747 = vmatprep.subr.bf16.mxu0 %v12569_v12  ;;  %v12718_v58 = vsub.f32 %v6205_v53, %v12709_v55 }
  0xcb   :  { %v6286_v0 = vand.u32 4294901760, %v12718_v58 }
  0xcd   :  { %v6287_v8 = vsub.f32 %v12718_v58, %v6286_v0 }
  0xcf   :  { %10991 = vmatmul.mubr.f32.vlgmr.msra.gmra.mrb[4].mxu0 %v2193_v51 }
  0xd0   :  { %11749 = vmatpush3.bf16.msra.mxu0 %v12569_v12  ;;  %10997 = vmatprep.mubr.f32.mxu0 %v2183_v49  ;;  %v594_v49 = vsel %vm81_vm0, %v74_v47, 0 }
  0xd1   :  { %11775 = vmatprep.subr.bf16.mxu0 %v12569_v12  ;;  %v12703_v52 = vand.u32 4294901760, %v594_v49 }
  0xd3   :  { %v12713_v56 = vsub.f32 %v594_v49, %v12703_v52 }
  0xd5   :  { %v12721_v59 = vand.u32 4294901760, %v12713_v56 }
  0xd7   :  { %10998 = vmatmul.mubr.f32.vlgmr.msra.gmra.mrb[4].mxu0 %v2193_v51  ;;  %v6202_v51 = vsel %vm81_vm0, %v12694_v48, 0 }
  0xd8   :  { %11777 = vmatpush3.bf16.msra.mxu0 %v12569_v12  ;;  %11046 = vmatprep.mubr.f32.mxu0 %v3207_v15  ;;  %v12707_v54 = vand.u32 4294901760, %v6202_v51 }
  0xd9   :  { %11779 = vmatprep.subr.bf16.mxu0 %v12577_v31 }
  0xda   :  { %v6275_v57 = vsub.f32 %v6202_v51, %v12707_v54 }
  0xdb   :  { %11047 = vmatmul.mubr.f32.vlgmr.msra.gmra.mrb[6].mxu0 %v3217_v17 }
  0xdc   :  { %11781 = vmatpush3.bf16.msra.mxu0 %v12577_v31  ;;  %11053 = vmatprep.mubr.f32.mxu0 %v3203_v63  ;;  %v6276_v60 = vand.u32 4294901760, %v6275_v57 }
  0xdd   :  { %11783 = vmatprep.subr.bf16.mxu0 %v12579_v32 }
  0xe3   :  { %11054 = vmatmul.mubr.f32.vlgmr.msra.gmra.mrb[6].mxu0 %v3213_v1 }
  0xe4   :  { %11785 = vmatpush3.bf16.msra.mxu0 %v12579_v32  ;;  %11060 = vmatprep.mubr.f32.mxu0 %v3204_v2  ;;  %v676_v2 = vsub.f32 %v12713_v56, %v12721_v59 }
  0xe5   :  { %11787 = vmatprep.subr.bf16.mxu0 %v12569_v12 }
  0xe6   :  { %v12730_v15 = vand.u32 4294901760, %v676_v2  ;;  %v8232_v2 = vmul.f32 %v12699_v50, %v12699_v50 }
  0xeb   :  { %11061 = vmatmul.mubr.f32.vlgmr.msra.gmra.mrb[6].mxu0 %v3214_v3 }
  0xec   :  { %11789 = vmatpush3.bf16.msra.mxu0 %v12569_v12  ;;  %11067 = vmatprep.mubr.f32.mxu0 %v3205_v4  ;;  %v6277_v4 = vsub.f32 %v6275_v57, %v6276_v60 }
  0xed   :  { %11791 = vmatprep.subr.bf16.mxu0 %v12586_v33 }
  0xee   :  { %v6278_v20 = vand.u32 4294901760, %v6277_v4  ;;  %v8237_v4 = vsel %vm81_vm0, %v8232_v2, 0 }
  0xf3   :  { %11068 = vmatmul.mubr.f32.vlgmr.msra.gmra.mrb[6].mxu0 %v3215_v5 }
  0xf4   :  { %11793 = vmatpush3.bf16.msra.mxu0 %v12586_v33  ;;  %11074 = vmatprep.mubr.f32.mxu0 %v3203_v63 }
  0xf5   :  { %11795 = vmatprep.subr.bf16.mxu0 %v12569_v12 }
  0xfb   :  { %11075 = vmatmul.mubr.f32.vlgmr.msra.gmra.mrb[6].mxu0 %v3213_v1 }
  0xfc   :  { %11797 = vmatpush3.bf16.msra.mxu0 %v12569_v12  ;;  %11081 = vmatprep.mubr.f32.mxu0 %v3203_v63 }
  0xfd   :  { %11823 = vmatprep.subr.bf16.mxu0 %v12569_v12 }
 0x103   :  { %11082 = vmatmul.mubr.f32.vlgmr.msra.gmra.mrb[6].mxu0 %v3213_v1 }
 0x104   :  { %11825 = vmatpush3.bf16.msra.mxu0 %v12569_v12  ;;  %11130 = vmatprep.mubr.f32.mxu0 %v4227_v14  ;;  %v7217_v14 = vsel %vm81_vm0, %v7212_v9, 0 }
 0x105   :  { %11827 = vmatprep.subr.bf16.mxu0 %v12577_v31  ;;  %v12760_v34 = vand.u32 4294901760, %v7217_v14 }
 0x107   :  { %11131 = vmatmul.mubr.f32.vlgmr.msra.gmra.mrb[8].mxu0 %v4237_v29  ;;  %v12769_v37 = vsub.f32 %v7217_v14, %v12760_v34 }
 0x108   :  { %11829 = vmatpush3.bf16.msra.mxu0 %v12577_v31  ;;  %11137 = vmatprep.mubr.f32.mxu0 %v4223_v21 }
 0x109   :  { %11831 = vmatprep.subr.bf16.mxu0 %v12579_v32 }
 0x10f   :  { %11138 = vmatmul.mubr.f32.vlgmr.msra.gmra.mrb[8].mxu0 %v4233_v23 }
 0x110   :  { %11833 = vmatpush3.bf16.msra.mxu0 %v12579_v32  ;;  %11144 = vmatprep.mubr.f32.mxu0 %v4224_v24 }
 0x111   :  { %11835 = vmatprep.subr.bf16.mxu0 %v12569_v12 }
 0x117   :  { %11145 = vmatmul.mubr.f32.vlgmr.msra.gmra.mrb[8].mxu0 %v4234_v25 }
 0x118   :  { %11837 = vmatpush3.bf16.msra.mxu0 %v12569_v12  ;;  %11151 = vmatprep.mubr.f32.mxu0 %v4225_v26 }
 0x119   :  { %11839 = vmatprep.subr.bf16.mxu0 %v12586_v33 }
 0x11f   :  { %11152 = vmatmul.mubr.f32.vlgmr.msra.gmra.mrb[8].mxu0 %v4235_v27  ;;  %v7211_v27 = vmul.f32 %v12670_v30, %v12670_v30 }
 0x120   :  { %11841 = vmatpush3.bf16.msra.mxu0 %v12586_v33  ;;  %11158 = vmatprep.mubr.f32.mxu0 %v4223_v21 }
 0x121   :  { %11843 = vmatprep.subr.bf16.mxu0 %v12569_v12  ;;  %v7214_v28 = vsel %vm81_vm0, %v7211_v27, 0 }
 0x122   :  { %v12758_v29 = vand.u32 4294901760, %v7214_v28 }
 0x127   :  { %11159 = vmatmul.mubr.f32.vlgmr.msra.gmra.mrb[8].mxu0 %v4233_v23 }
 0x128   :  { %11845 = vmatpush3.bf16.msra.mxu0 %v12569_v12  ;;  %11165 = vmatprep.mubr.f32.mxu0 %v4223_v21 }
 0x129   :  { %11871 = vmatprep.subr.bf16.mxu0 %v12569_v12 }
 0x12f   :  { %11166 = vmatmul.mubr.f32.vlgmr.msra.gmra.mrb[8].mxu0 %v4233_v23  ;;  %v6288_v23 = vand.u32 4294901760, %v6287_v8 }
 0x130   :  { %11873 = vmatpush3.bf16.msra.mxu0 %v12569_v12  ;;  %11214 = vmatprep.mubr.f32.mxu0 %v5268_v45 }
 0x131   :  { %11875 = vmatprep.subr.bf16.mxu0 %v12577_v31 }
 0x133   :  { %11215 = vmatmul.mubr.f32.vlgmr.msra.gmra.mrb[10].mxu0 %v5278_v46 }
 0x134   :  { %11877 = vmatpush3.bf16.msra.mxu0 %v12577_v31  ;;  %11221 = vmatprep.mubr.f32.mxu0 %v5264_v36 }
 0x135   :  { %11879 = vmatprep.subr.bf16.mxu0 %v12579_v32 }
 0x13b   :  { %11222 = vmatmul.mubr.f32.vlgmr.msra.gmra.mrb[10].mxu0 %v12680_v38 }
 0x13c   :  { %11881 = vmatpush3.bf16.msra.mxu0 %v12579_v32  ;;  %11228 = vmatprep.mubr.f32.mxu0 %v5265_v39 }
 0x13d   :  { %11883 = vmatprep.subr.bf16.mxu0 %v12569_v12 }
 0x143   :  { %11229 = vmatmul.mubr.f32.vlgmr.msra.gmra.mrb[10].mxu0 %v5275_v40 }
 0x144   :  { %11885 = vmatpush3.bf16.msra.mxu0 %v12569_v12  ;;  %11235 = vmatprep.mubr.f32.mxu0 %v5266_v41 }
 0x145   :  { %11887 = vmatprep.subr.bf16.mxu0 %v12586_v33 }
 0x14b   :  { %11236 = vmatmul.mubr.f32.vlgmr.msra.gmra.mrb[10].mxu0 %v5276_v42  ;;  %v7298_v42 = vand.u32 4294901760, %v12769_v37 }
 0x14c   :  { %11889 = vmatpush3.bf16.msra.mxu0 %v12586_v33  ;;  %11242 = vmatprep.mubr.f32.mxu0 %v5264_v36 }
 0x14d   :  { %11891 = vmatprep.subr.bf16.mxu0 %v12569_v12  ;;  %v7299_v51 = vsub.f32 %v12769_v37, %v7298_v42 }
 0x152   :  { %v10831_v61 = vpop.f32.mrb[0].mxu0 }
 0x153   :  { %v600_v62 = vand.u32 4294901760, %v10831_v61  ;;  %v580_v63 = vpop.f32.mrb[1].mxu0  ;;  %11243 = vmatmul.mubr.f32.vlgmr.msra.gmra.mrb[10].mxu0 %v12680_v38 }
 0x154   :  { %v597_v1 = vand.u32 4294901760, %v580_v63  ;;  %11893 = vmatpush3.bf16.msra.mxu0 %v12569_v12  ;;  %11249 = vmatprep.mubr.f32.mxu0 %v5264_v36  ;;  %v12766_v36 = vsub.f32 %v7214_v28, %v12758_v29 }
 0x155   :  { %v692_v3 = vsub.f32 %v10831_v61, %v600_v62  ;;  %11919 = vmatprep.subr.bf16.mxu0 %v12569_v12 }
 0x156   :  { %v11654_v5 = vpack.c.bf16 %v600_v62, %v597_v1  ;;  %v685_v6 = vsub.f32 %v580_v63, %v597_v1  ;;  %v7300_v62 = vand.u32 4294901760, %v7299_v51 }
 0x157   :  { %v693_v7 = vand.u32 4294901760, %v692_v3 }
 0x158   :  { %v686_v11 = vand.u32 4294901760, %v685_v6  ;;  %11655 = vmatprep.subr.bf16.mxu1 %v11654_v5  ;;  %v11662_v17 = vpack.c.bf16 %v692_v3, %v685_v6 }
 0x159   :  { %v694_v18 = vsub.f32 %v692_v3, %v693_v7  ;;  %11657 = vmatpush3.bf16.msra.mxu1 %v11654_v5 }
 0x15a   :  { %v687_v21 = vsub.f32 %v685_v6, %v686_v11  ;;  %v11670_v22 = vpack.c.bf16 %v693_v7, %v686_v11  ;;  %v12819_v6 = vand.u32 4294901760, %v8237_v4 }
 0x15b   :  { %11250 = vmatmul.mubr.f32.vlgmr.msra.gmra.mrb[10].mxu0 %v12680_v38  ;;  %v695_v24 = vand.u32 4294901760, %v694_v18  ;;  %v7288_v38 = vand.u32 4294901760, %v12766_v36 }
 0x15c   :  { %10837 = vmatmul.mubr.f32.vlgmr.msra.gmra.mrb[0].mxu1 %v12730_v15  ;;  %11921 = vmatpush3.bf16.msra.mxu0 %v12569_v12  ;;  %v688_v25 = vand.u32 4294901760, %v687_v21  ;;  %v12828_v8 = vsub.f32 %v8237_v4, %v12819_v6 }
 0x15d   :  { %11298 = vmatprep.mubr.f32.mxu0 %v6278_v20  ;;  %10843 = vmatprep.mubr.f32.mxu1 %v12635_v10  ;;  %v7289_v45 = vsub.f32 %v12766_v36, %v7288_v38 }
 0x15e   :  { %v11658_v26 = vpack.c.bf16 %v695_v24, %v688_v25  ;;  %11923 = vmatprep.subr.bf16.mxu0 %v12577_v31  ;;  %v8318_v21 = vand.u32 4294901760, %v12828_v8 }
 0x15f   :  { %11299 = vmatmul.mubr.f32.vlgmr.msra.gmra.mrb[12].mxu0 %v6288_v23 }
 0x160   :  { %11659 = vmatprep.subr.bf16.mxu1 %v11658_v26  ;;  %11925 = vmatpush3.bf16.msra.mxu0 %v12577_v31  ;;  %v8319_v9 = vsub.f32 %v12828_v8, %v8318_v21 }
 0x161   :  { %11661 = vmatpush3.bf16.msra.mxu1 %v11658_v26  ;;  %11305 = vmatprep.mubr.f32.mxu0 %v12707_v54 }
 0x162   :  { %11663 = vmatprep.subr.bf16.mxu1 %v11662_v17  ;;  %11927 = vmatprep.subr.bf16.mxu0 %v12579_v32 }
 0x164   :  { %10844 = vmatmul.mubr.f32.vlgmr.msra.gmra.mrb[0].mxu1 %v12703_v52 }
 0x165   :  { %11665 = vmatpush3.bf16.msra.mxu1 %v11662_v17  ;;  %10850 = vmatprep.mubr.f32.mxu1 %v12638_v13 }
 0x166   :  { %11667 = vmatprep.subr.bf16.mxu1 %v11654_v5 }
 0x167   :  { %11306 = vmatmul.mubr.f32.vlgmr.msra.gmra.mrb[12].mxu0 %v12709_v55 }
 0x168   :  { %11929 = vmatpush3.bf16.msra.mxu0 %v12579_v32  ;;  %11312 = vmatprep.mubr.f32.mxu0 %v6275_v57 }
 0x169   :  { %11931 = vmatprep.subr.bf16.mxu0 %v12569_v12 }
 0x16c   :  { %10851 = vmatmul.mubr.f32.vlgmr.msra.gmra.mrb[0].mxu1 %v12713_v56 }
 0x16d   :  { %11669 = vmatpush3.bf16.msra.mxu1 %v11654_v5  ;;  %10857 = vmatprep.mubr.f32.mxu1 %v12641_v16 }
 0x16e   :  { %11671 = vmatprep.subr.bf16.mxu1 %v11670_v22 }
 0x16f   :  { %11313 = vmatmul.mubr.f32.vlgmr.msra.gmra.mrb[12].mxu0 %v12718_v58 }
 0x170   :  { %11933 = vmatpush3.bf16.msra.mxu0 %v12569_v12  ;;  %11319 = vmatprep.mubr.f32.mxu0 %v6276_v60 }
 0x171   :  { %11935 = vmatprep.subr.bf16.mxu0 %v12586_v33 }
 0x174   :  { %10858 = vmatmul.mubr.f32.vlgmr.msra.gmra.mrb[0].mxu1 %v12721_v59 }
 0x175   :  { %11673 = vmatpush3.bf16.msra.mxu1 %v11670_v22  ;;  %10864 = vmatprep.mubr.f32.mxu1 %v12635_v10 }
 0x176   :  { %11675 = vmatprep.subr.bf16.mxu1 %v11654_v5 }
 0x177   :  { %11320 = vmatmul.mubr.f32.vlgmr.msra.gmra.mrb[12].mxu0 %v6286_v0 }
 0x178   :  { %11937 = vmatpush3.bf16.msra.mxu0 %v12586_v33  ;;  %11326 = vmatprep.mubr.f32.mxu0 %v12707_v54 }
 0x179   :  { %11939 = vmatprep.subr.bf16.mxu0 %v12569_v12 }
 0x17c   :  { %10865 = vmatmul.mubr.f32.vlgmr.msra.gmra.mrb[0].mxu1 %v12703_v52 }
 0x17d   :  { %11677 = vmatpush3.bf16.msra.mxu1 %v11654_v5  ;;  %10871 = vmatprep.mubr.f32.mxu1 %v12635_v10 }
 0x17e   :  { %v10915_v39 = vpop.f32.mrb[2].mxu0 }
 0x17f   :  { %v1610_v40 = vand.u32 4294901760, %v10915_v39  ;;  %v1596_v41 = vpop.f32.mrb[3].mxu0  ;;  %11327 = vmatmul.mubr.f32.vlgmr.msra.gmra.mrb[12].mxu0 %v12709_v55 }
 0x180   :  { %v1607_v43 = vand.u32 4294901760, %v1596_v41  ;;  %11941 = vmatpush3.bf16.msra.mxu0 %v12569_v12  ;;  %11333 = vmatprep.mubr.f32.mxu0 %v12707_v54  ;;  %v7290_v54 = vand.u32 4294901760, %v7289_v45 }
 0x181   :  { %v1702_v44 = vsub.f32 %v10915_v39, %v1610_v40  ;;  %11967 = vmatprep.subr.bf16.mxu0 %v12569_v12  ;;  %v8320_v39 = vand.u32 4294901760, %v8319_v9 }
 0x182   :  { %v12780_v46 = vpack.c.bf16 %v1610_v40, %v1607_v43  ;;  %v1695_v47 = vsub.f32 %v1596_v41, %v1607_v43  ;;  %v9252_v43 = vmul.f32 %v12699_v50, %v12676_v35 }
 0x183   :  { %v1703_v49 = vand.u32 4294901760, %v1702_v44 }
 0x184   :  { %v1696_v53 = vand.u32 4294901760, %v1695_v47  ;;  %10872 = vmatmul.mubr.f32.vlgmr.msra.gmra.mrb[0].mxu1 %v12703_v52  ;;  %11703 = vmatprep.subr.bf16.mxu1 %v12780_v46  ;;  %v11710_v57 = vpack.c.bf16 %v1702_v44, %v1695_v47  ;;  %v9257_v45 = vsel %vm81_vm0, %v9252_v43, 0 }
 0x185   :  { %v1704_v58 = vsub.f32 %v1702_v44, %v1703_v49  ;;  %11705 = vmatpush3.bf16.msra.mxu1 %v12780_v46  ;;  %10920 = vmatprep.mubr.f32.mxu1 %v12647_v19 }
 0x186   :  { %v1697_v60 = vsub.f32 %v1695_v47, %v1696_v53  ;;  %v11718_v61 = vpack.c.bf16 %v1703_v49, %v1696_v53 }
 0x187   :  { %11334 = vmatmul.mubr.f32.vlgmr.msra.gmra.mrb[12].mxu0 %v12709_v55  ;;  %v1705_v63 = vand.u32 4294901760, %v1704_v58  ;;  %v8231_v55 = vmul.f32 %v12694_v48, %v12694_v48 }
 0x188   :  { %10921 = vmatmul.mubr.f32.vlgmr.msra.gmra.mrb[2].mxu1 %v12730_v15  ;;  %11969 = vmatpush3.bf16.msra.mxu0 %v12569_v12  ;;  %v1698_v0 = vand.u32 4294901760, %v1697_v60 }
 0x189   :  { %11382 = vmatprep.mubr.f32.mxu0 %v7290_v54  ;;  %10927 = vmatprep.mubr.f32.mxu1 %v12635_v10  ;;  %v8234_v3 = vsel %vm81_vm0, %v8231_v55, 0 }
 0x18a   :  { %v11706_v1 = vpack.c.bf16 %v1705_v63, %v1698_v0  ;;  %11971 = vmatprep.subr.bf16.mxu0 %v12577_v31  ;;  %v12816_v5 = vand.u32 4294901760, %v8234_v3 }
 0x18b   :  { %11383 = vmatmul.mubr.f32.vlgmr.msra.gmra.mrb[14].mxu0 %v7300_v62 }
 0x18c   :  { %11707 = vmatprep.subr.bf16.mxu1 %v11706_v1  ;;  %11973 = vmatpush3.bf16.msra.mxu0 %v12577_v31  ;;  %v12825_v7 = vsub.f32 %v8234_v3, %v12816_v5 }
 0x18d   :  { %11709 = vmatpush3.bf16.msra.mxu1 %v11706_v1  ;;  %11389 = vmatprep.mubr.f32.mxu0 %v12758_v29 }
 0x18e   :  { %11711 = vmatprep.subr.bf16.mxu1 %v11710_v57  ;;  %11975 = vmatprep.subr.bf16.mxu0 %v12579_v32  ;;  %v8308_v11 = vand.u32 4294901760, %v12825_v7 }
 0x190   :  { %10928 = vmatmul.mubr.f32.vlgmr.msra.gmra.mrb[2].mxu1 %v12703_v52  ;;  %v8309_v24 = vsub.f32 %v12825_v7, %v8308_v11 }
 0x191   :  { %11713 = vmatpush3.bf16.msra.mxu1 %v11710_v57  ;;  %10934 = vmatprep.mubr.f32.mxu1 %v12638_v13 }
 0x192   :  { %11715 = vmatprep.subr.bf16.mxu1 %v12780_v46 }
 0x193   :  { %11390 = vmatmul.mubr.f32.vlgmr.msra.gmra.mrb[14].mxu0 %v12760_v34 }
 0x194   :  { %11977 = vmatpush3.bf16.msra.mxu0 %v12579_v32  ;;  %11396 = vmatprep.mubr.f32.mxu0 %v12766_v36 }
 0x195   :  { %11979 = vmatprep.subr.bf16.mxu0 %v12569_v12 }
 0x198   :  { %10935 = vmatmul.mubr.f32.vlgmr.msra.gmra.mrb[2].mxu1 %v12713_v56 }
 0x199   :  { %11717 = vmatpush3.bf16.msra.mxu1 %v12780_v46  ;;  %10941 = vmatprep.mubr.f32.mxu1 %v12641_v16 }
 0x19a   :  { %11719 = vmatprep.subr.bf16.mxu1 %v11718_v61 }
 0x19b   :  { %11397 = vmatmul.mubr.f32.vlgmr.msra.gmra.mrb[14].mxu0 %v12769_v37 }
 0x19c   :  { %11981 = vmatpush3.bf16.msra.mxu0 %v12569_v12  ;;  %11403 = vmatprep.mubr.f32.mxu0 %v7288_v38 }
 0x19d   :  { %11983 = vmatprep.subr.bf16.mxu0 %v12586_v33 }
 0x1a0   :  { %10942 = vmatmul.mubr.f32.vlgmr.msra.gmra.mrb[2].mxu1 %v12721_v59 }
 0x1a1   :  { %11721 = vmatpush3.bf16.msra.mxu1 %v11718_v61  ;;  %10948 = vmatprep.mubr.f32.mxu1 %v12635_v10 }
 0x1a2   :  { %11723 = vmatprep.subr.bf16.mxu1 %v12780_v46 }
 0x1a3   :  { %11404 = vmatmul.mubr.f32.vlgmr.msra.gmra.mrb[14].mxu0 %v7298_v42 }
 0x1a4   :  { %11985 = vmatpush3.bf16.msra.mxu0 %v12586_v33  ;;  %11410 = vmatprep.mubr.f32.mxu0 %v12758_v29 }
 0x1a5   :  { %11987 = vmatprep.subr.bf16.mxu0 %v12569_v12 }
 0x1a8   :  { %10949 = vmatmul.mubr.f32.vlgmr.msra.gmra.mrb[2].mxu1 %v12703_v52 }
 0x1a9   :  { %11725 = vmatpush3.bf16.msra.mxu1 %v12780_v46  ;;  %10955 = vmatprep.mubr.f32.mxu1 %v12635_v10 }
 0x1aa   :  { %v10999_v17 = vpop.f32.mrb[4].mxu0 }
 0x1ab   :  { %v2622_v18 = vand.u32 4294901760, %v10999_v17  ;;  %v2608_v20 = vpop.f32.mrb[5].mxu0  ;;  %11411 = vmatmul.mubr.f32.vlgmr.msra.gmra.mrb[14].mxu0 %v12760_v34 }
 0x1ac   :  { %v2619_v22 = vand.u32 4294901760, %v2608_v20  ;;  %11989 = vmatpush3.bf16.msra.mxu0 %v12569_v12  ;;  %11417 = vmatprep.mubr.f32.mxu0 %v12758_v29  ;;  %v8310_v29 = vand.u32 4294901760, %v8309_v24 }
 0x1ad   :  { %v2714_v23 = vsub.f32 %v10999_v17, %v2622_v18  ;;  %12015 = vmatprep.subr.bf16.mxu0 %v12569_v12 }
 0x1ae   :  { %v12840_v25 = vpack.c.bf16 %v2622_v18, %v2619_v22  ;;  %v2707_v26 = vsub.f32 %v2608_v20, %v2619_v22 }
 0x1af   :  { %v2715_v27 = vand.u32 4294901760, %v2714_v23 }
 0x1b0   :  { %v2708_v28 = vand.u32 4294901760, %v2707_v26  ;;  %10956 = vmatmul.mubr.f32.vlgmr.msra.gmra.mrb[2].mxu1 %v12703_v52  ;;  %11751 = vmatprep.subr.bf16.mxu1 %v12840_v25  ;;  %v11758_v14 = vpack.c.bf16 %v2714_v23, %v2707_v26 }
 0x1b1   :  { %v2716_v36 = vsub.f32 %v2714_v23, %v2715_v27  ;;  %11753 = vmatpush3.bf16.msra.mxu1 %v12840_v25  ;;  %11004 = vmatprep.mubr.f32.mxu1 %v12647_v19 }
 0x1b2   :  { %v2709_v37 = vsub.f32 %v2707_v26, %v2708_v28  ;;  %v11766_v38 = vpack.c.bf16 %v2715_v27, %v2708_v28 }
 0x1b3   :  { %11418 = vmatmul.mubr.f32.vlgmr.msra.gmra.mrb[14].mxu0 %v12760_v34  ;;  %v2717_v40 = vand.u32 4294901760, %v2716_v36  ;;  %v9251_v34 = vmul.f32 %v12694_v48, %v12670_v30  ;;  %v12879_v48 = vand.u32 4294901760, %v9257_v45 }
 0x1b4   :  { %11005 = vmatmul.mubr.f32.vlgmr.msra.gmra.mrb[4].mxu1 %v12730_v15  ;;  %12017 = vmatpush3.bf16.msra.mxu0 %v12569_v12  ;;  %v2710_v41 = vand.u32 4294901760, %v2709_v37 }
 0x1b5   :  { %11466 = vmatprep.mubr.f32.mxu0 %v8310_v29  ;;  %11011 = vmatprep.mubr.f32.mxu1 %v12635_v10  ;;  %v9254_v44 = vsel %vm81_vm0, %v9251_v34, 0  ;;  %v12886_v50 = vsub.f32 %v9257_v45, %v12879_v48 }
 0x1b6   :  { %v11754_v42 = vpack.c.bf16 %v2717_v40, %v2710_v41  ;;  %12019 = vmatprep.subr.bf16.mxu0 %v12577_v31  ;;  %v12876_v30 = vand.u32 4294901760, %v9254_v44 }
 0x1b7   :  { %11467 = vmatmul.mubr.f32.vlgmr.msra.gmra.mrb[16].mxu0 %v8320_v39  ;;  %v9338_v53 = vand.u32 4294901760, %v12886_v50 }
 0x1b8   :  { %11755 = vmatprep.subr.bf16.mxu1 %v11754_v42  ;;  %12021 = vmatpush3.bf16.msra.mxu0 %v12577_v31  ;;  %v9327_v35 = vsub.f32 %v9254_v44, %v12876_v30 }
 0x1b9   :  { %11757 = vmatpush3.bf16.msra.mxu1 %v11754_v42  ;;  %11473 = vmatprep.mubr.f32.mxu0 %v12816_v5  ;;  %v9339_v63 = vsub.f32 %v12886_v50, %v9338_v53 }
 0x1ba   :  { %11759 = vmatprep.subr.bf16.mxu1 %v11758_v14  ;;  %12023 = vmatprep.subr.bf16.mxu0 %v12579_v32  ;;  %v9328_v46 = vand.u32 4294901760, %v9327_v35 }
 0x1bc   :  { %11012 = vmatmul.mubr.f32.vlgmr.msra.gmra.mrb[4].mxu1 %v12703_v52  ;;  %v9329_v54 = vsub.f32 %v9327_v35, %v9328_v46 }
 0x1bd   :  { %11761 = vmatpush3.bf16.msra.mxu1 %v11758_v14  ;;  %11018 = vmatprep.mubr.f32.mxu1 %v12638_v13 }
 0x1be   :  { %11763 = vmatprep.subr.bf16.mxu1 %v12840_v25  ;;  %v9330_v2 = vand.u32 4294901760, %v9329_v54 }
 0x1bf   :  { %11474 = vmatmul.mubr.f32.vlgmr.msra.gmra.mrb[16].mxu0 %v12819_v6 }
 0x1c0   :  { %12025 = vmatpush3.bf16.msra.mxu0 %v12579_v32  ;;  %11480 = vmatprep.mubr.f32.mxu0 %v12825_v7 }
 0x1c1   :  { %12027 = vmatprep.subr.bf16.mxu0 %v12569_v12 }
 0x1c4   :  { %11019 = vmatmul.mubr.f32.vlgmr.msra.gmra.mrb[4].mxu1 %v12713_v56 }
 0x1c5   :  { %11765 = vmatpush3.bf16.msra.mxu1 %v12840_v25  ;;  %11025 = vmatprep.mubr.f32.mxu1 %v12641_v16 }
 0x1c6   :  { %11767 = vmatprep.subr.bf16.mxu1 %v11766_v38 }
 0x1c7   :  { %11481 = vmatmul.mubr.f32.vlgmr.msra.gmra.mrb[16].mxu0 %v12828_v8 }
 0x1c8   :  { %12029 = vmatpush3.bf16.msra.mxu0 %v12569_v12  ;;  %11487 = vmatprep.mubr.f32.mxu0 %v8308_v11 }
 0x1c9   :  { %12031 = vmatprep.subr.bf16.mxu0 %v12586_v33 }
 0x1cc   :  { %11026 = vmatmul.mubr.f32.vlgmr.msra.gmra.mrb[4].mxu1 %v12721_v59 }
 0x1cd   :  { %11769 = vmatpush3.bf16.msra.mxu1 %v11766_v38  ;;  %11032 = vmatprep.mubr.f32.mxu1 %v12635_v10 }
 0x1ce   :  { %11771 = vmatprep.subr.bf16.mxu1 %v12840_v25 }
 0x1cf   :  { %11488 = vmatmul.mubr.f32.vlgmr.msra.gmra.mrb[16].mxu0 %v8318_v21 }
 0x1d0   :  { %12033 = vmatpush3.bf16.msra.mxu0 %v12586_v33  ;;  %11494 = vmatprep.mubr.f32.mxu0 %v12816_v5 }
 0x1d1   :  { %12035 = vmatprep.subr.bf16.mxu0 %v12569_v12 }
 0x1d4   :  { %11033 = vmatmul.mubr.f32.vlgmr.msra.gmra.mrb[4].mxu1 %v12703_v52 }
 0x1d5   :  { %11773 = vmatpush3.bf16.msra.mxu1 %v12840_v25  ;;  %11039 = vmatprep.mubr.f32.mxu1 %v12635_v10 }
 0x1d6   :  { %v11083_v47 = vpop.f32.mrb[6].mxu0 }
 0x1d7   :  { %v3642_v49 = vand.u32 4294901760, %v11083_v47  ;;  %v3628_v51 = vpop.f32.mrb[7].mxu0  ;;  %11495 = vmatmul.mubr.f32.vlgmr.msra.gmra.mrb[16].mxu0 %v12819_v6 }
 0x1d8   :  { %v3639_v57 = vand.u32 4294901760, %v3628_v51  ;;  %12037 = vmatpush3.bf16.msra.mxu0 %v12569_v12  ;;  %11501 = vmatprep.mubr.f32.mxu0 %v12816_v5  ;;  %v9340_v5 = vand.u32 4294901760, %v9339_v63 }
 0x1d9   :  { %v3734_v58 = vsub.f32 %v11083_v47, %v3642_v49  ;;  %12063 = vmatprep.subr.bf16.mxu0 %v12569_v12 }
 0x1da   :  { %v11798_v60 = vpack.c.bf16 %v3642_v49, %v3639_v57  ;;  %v3727_v61 = vsub.f32 %v3628_v51, %v3639_v57 }
 0x1db   :  { %v3735_v62 = vand.u32 4294901760, %v3734_v58 }
 0x1dc   :  { %v3728_v0 = vand.u32 4294901760, %v3727_v61  ;;  %11040 = vmatmul.mubr.f32.vlgmr.msra.gmra.mrb[4].mxu1 %v12703_v52  ;;  %11799 = vmatprep.subr.bf16.mxu1 %v11798_v60  ;;  %v11806_v1 = vpack.c.bf16 %v3734_v58, %v3727_v61 }
 0x1dd   :  { %v3736_v55 = vsub.f32 %v3734_v58, %v3735_v62  ;;  %11801 = vmatpush3.bf16.msra.mxu1 %v11798_v60  ;;  %11088 = vmatprep.mubr.f32.mxu1 %v12647_v19 }
 0x1de   :  { %v3729_v3 = vsub.f32 %v3727_v61, %v3728_v0  ;;  %v11814_v4 = vpack.c.bf16 %v3735_v62, %v3728_v0 }
 0x1df   :  { %11502 = vmatmul.mubr.f32.vlgmr.msra.gmra.mrb[16].mxu0 %v12819_v6  ;;  %v3737_v7 = vand.u32 4294901760, %v3736_v55 }
 0x1e0   :  { %11089 = vmatmul.mubr.f32.vlgmr.msra.gmra.mrb[6].mxu1 %v12730_v15  ;;  %12065 = vmatpush3.bf16.msra.mxu0 %v12569_v12  ;;  %v3730_v8 = vand.u32 4294901760, %v3729_v3 }
 0x1e1   :  { %11550 = vmatprep.mubr.f32.mxu0 %v9330_v2  ;;  %11095 = vmatprep.mubr.f32.mxu1 %v12635_v10 }
 0x1e2   :  { %v11802_v11 = vpack.c.bf16 %v3737_v7, %v3730_v8  ;;  %12067 = vmatprep.subr.bf16.mxu0 %v12577_v31 }
 0x1e3   :  { %11551 = vmatmul.mubr.f32.vlgmr.msra.gmra.mrb[18].mxu0 %v9340_v5 }
 0x1e4   :  { %11803 = vmatprep.subr.bf16.mxu1 %v11802_v11  ;;  %12069 = vmatpush3.bf16.msra.mxu0 %v12577_v31 }
 0x1e5   :  { %11805 = vmatpush3.bf16.msra.mxu1 %v11802_v11  ;;  %11557 = vmatprep.mubr.f32.mxu0 %v12876_v30 }
 0x1e6   :  { %11807 = vmatprep.subr.bf16.mxu1 %v11806_v1  ;;  %12071 = vmatprep.subr.bf16.mxu0 %v12579_v32 }
 0x1e8   :  { %11096 = vmatmul.mubr.f32.vlgmr.msra.gmra.mrb[6].mxu1 %v12703_v52 }
 0x1e9   :  { %11809 = vmatpush3.bf16.msra.mxu1 %v11806_v1  ;;  %11102 = vmatprep.mubr.f32.mxu1 %v12638_v13 }
 0x1ea   :  { %11811 = vmatprep.subr.bf16.mxu1 %v11798_v60 }
 0x1eb   :  { %11558 = vmatmul.mubr.f32.vlgmr.msra.gmra.mrb[18].mxu0 %v12879_v48 }
 0x1ec   :  { %12073 = vmatpush3.bf16.msra.mxu0 %v12579_v32  ;;  %11564 = vmatprep.mubr.f32.mxu0 %v9327_v35 }
 0x1ed   :  { %12075 = vmatprep.subr.bf16.mxu0 %v12569_v12 }
 0x1f0   :  { %11103 = vmatmul.mubr.f32.vlgmr.msra.gmra.mrb[6].mxu1 %v12713_v56 }
 0x1f1   :  { %11813 = vmatpush3.bf16.msra.mxu1 %v11798_v60  ;;  %11109 = vmatprep.mubr.f32.mxu1 %v12641_v16 }
 0x1f2   :  { %11815 = vmatprep.subr.bf16.mxu1 %v11814_v4 }
 0x1f3   :  { %11565 = vmatmul.mubr.f32.vlgmr.msra.gmra.mrb[18].mxu0 %v12886_v50 }
 0x1f4   :  { %12077 = vmatpush3.bf16.msra.mxu0 %v12569_v12  ;;  %11571 = vmatprep.mubr.f32.mxu0 %v9328_v46 }
 0x1f5   :  { %12079 = vmatprep.subr.bf16.mxu0 %v12586_v33 }
 0x1f8   :  { %11110 = vmatmul.mubr.f32.vlgmr.msra.gmra.mrb[6].mxu1 %v12721_v59 }
 0x1f9   :  { %11817 = vmatpush3.bf16.msra.mxu1 %v11814_v4  ;;  %11116 = vmatprep.mubr.f32.mxu1 %v12635_v10 }
 0x1fa   :  { %11819 = vmatprep.subr.bf16.mxu1 %v11798_v60 }
 0x1fb   :  { %11572 = vmatmul.mubr.f32.vlgmr.msra.gmra.mrb[18].mxu0 %v9338_v53 }
 0x1fc   :  { %12081 = vmatpush3.bf16.msra.mxu0 %v12586_v33  ;;  %11578 = vmatprep.mubr.f32.mxu0 %v12876_v30 }
 0x1fd   :  { %12083 = vmatprep.subr.bf16.mxu0 %v12569_v12 }
 0x200   :  { %11117 = vmatmul.mubr.f32.vlgmr.msra.gmra.mrb[6].mxu1 %v12703_v52 }
 0x201   :  { %11821 = vmatpush3.bf16.msra.mxu1 %v11798_v60  ;;  %11123 = vmatprep.mubr.f32.mxu1 %v12635_v10 }
 0x202   :  { %v11167_v31 = vpop.f32.mrb[8].mxu0 }
 0x203   :  { %v4662_v32 = vand.u32 4294901760, %v11167_v31  ;;  %v4648_v6 = vpop.f32.mrb[9].mxu0  ;;  %11579 = vmatmul.mubr.f32.vlgmr.msra.gmra.mrb[18].mxu0 %v12879_v48 }
 0x204   :  { %v4659_v17 = vand.u32 4294901760, %v4648_v6  ;;  %12085 = vmatpush3.bf16.msra.mxu0 %v12569_v12  ;;  %11585 = vmatprep.mubr.f32.mxu0 %v12876_v30 }
 0x205   :  { %v4754_v33 = vsub.f32 %v11167_v31, %v4662_v32 }
 0x206   :  { %v11846_v18 = vpack.c.bf16 %v4662_v32, %v4659_v17  ;;  %v4747_v20 = vsub.f32 %v4648_v6, %v4659_v17 }
 0x207   :  { %v4755_v21 = vand.u32 4294901760, %v4754_v33 }
 0x208   :  { %v4748_v22 = vand.u32 4294901760, %v4747_v20  ;;  %11124 = vmatmul.mubr.f32.vlgmr.msra.gmra.mrb[6].mxu1 %v12703_v52  ;;  %11847 = vmatprep.subr.bf16.mxu1 %v11846_v18  ;;  %v11854_v23 = vpack.c.bf16 %v4754_v33, %v4747_v20 }
 0x209   :  { %v4756_v24 = vsub.f32 %v4754_v33, %v4755_v21  ;;  %11849 = vmatpush3.bf16.msra.mxu1 %v11846_v18  ;;  %11172 = vmatprep.mubr.f32.mxu1 %v12647_v19 }
 0x20a   :  { %v4749_v25 = vsub.f32 %v4747_v20, %v4748_v22  ;;  %v11862_v26 = vpack.c.bf16 %v4755_v21, %v4748_v22 }
 0x20b   :  { %11586 = vmatmul.mubr.f32.vlgmr.msra.gmra.mrb[18].mxu0 %v12879_v48  ;;  %v4757_v12 = vand.u32 4294901760, %v4756_v24 }
 0x20c   :  { %11173 = vmatmul.mubr.f32.vlgmr.msra.gmra.mrb[8].mxu1 %v12730_v15  ;;  %v4750_v27 = vand.u32 4294901760, %v4749_v25 }
 0x20d   :  { %11179 = vmatprep.mubr.f32.mxu1 %v12635_v10 }
 0x20e   :  { %v11850_v9 = vpack.c.bf16 %v4757_v12, %v4750_v27 }
 0x210   :  { %11851 = vmatprep.subr.bf16.mxu1 %v11850_v9 }
 0x211   :  { %11853 = vmatpush3.bf16.msra.mxu1 %v11850_v9 }
 0x212   :  { %11855 = vmatprep.subr.bf16.mxu1 %v11854_v23 }
 0x214   :  { %11180 = vmatmul.mubr.f32.vlgmr.msra.gmra.mrb[8].mxu1 %v12703_v52 }
 0x215   :  { %11857 = vmatpush3.bf16.msra.mxu1 %v11854_v23  ;;  %11186 = vmatprep.mubr.f32.mxu1 %v12638_v13 }
 0x216   :  { %11859 = vmatprep.subr.bf16.mxu1 %v11846_v18 }
 0x21c   :  { %11187 = vmatmul.mubr.f32.vlgmr.msra.gmra.mrb[8].mxu1 %v12713_v56 }
 0x21d   :  { %11861 = vmatpush3.bf16.msra.mxu1 %v11846_v18  ;;  %11193 = vmatprep.mubr.f32.mxu1 %v12641_v16 }
 0x21e   :  { %11863 = vmatprep.subr.bf16.mxu1 %v11862_v26 }
 0x224   :  { %11194 = vmatmul.mubr.f32.vlgmr.msra.gmra.mrb[8].mxu1 %v12721_v59 }
 0x225   :  { %11865 = vmatpush3.bf16.msra.mxu1 %v11862_v26  ;;  %11200 = vmatprep.mubr.f32.mxu1 %v12635_v10 }
 0x226   :  { %11867 = vmatprep.subr.bf16.mxu1 %v11846_v18 }
 0x22c   :  { %11201 = vmatmul.mubr.f32.vlgmr.msra.gmra.mrb[8].mxu1 %v12703_v52 }
 0x22d   :  { %11869 = vmatpush3.bf16.msra.mxu1 %v11846_v18  ;;  %11207 = vmatprep.mubr.f32.mxu1 %v12635_v10 }
 0x22e   :  { %v11251_v28 = vpop.f32.mrb[10].mxu0 }
 0x22f   :  { %v5703_v14 = vand.u32 4294901760, %v11251_v28  ;;  %v5689_v36 = vpop.f32.mrb[11].mxu0 }
 0x230   :  { %v5700_v29 = vand.u32 4294901760, %v5689_v36 }
 0x231   :  { %v5795_v37 = vsub.f32 %v11251_v28, %v5703_v14 }
 0x232   :  { %v11894_v38 = vpack.c.bf16 %v5703_v14, %v5700_v29  ;;  %v5788_v39 = vsub.f32 %v5689_v36, %v5700_v29 }
 0x233   :  { %v5796_v40 = vand.u32 4294901760, %v5795_v37 }
 0x234   :  { %v5789_v41 = vand.u32 4294901760, %v5788_v39  ;;  %11208 = vmatmul.mubr.f32.vlgmr.msra.gmra.mrb[8].mxu1 %v12703_v52  ;;  %11895 = vmatprep.subr.bf16.mxu1 %v11894_v38  ;;  %v11902_v42 = vpack.c.bf16 %v5795_v37, %v5788_v39 }
 0x235   :  { %v5797_v34 = vsub.f32 %v5795_v37, %v5796_v40  ;;  %11897 = vmatpush3.bf16.msra.mxu1 %v11894_v38  ;;  %11256 = vmatprep.mubr.f32.mxu1 %v12647_v19 }
 0x236   :  { %v5790_v43 = vsub.f32 %v5788_v39, %v5789_v41  ;;  %v11910_v44 = vpack.c.bf16 %v5796_v40, %v5789_v41 }
 0x237   :  { %v5798_v45 = vand.u32 4294901760, %v5797_v34 }
 0x238   :  { %11257 = vmatmul.mubr.f32.vlgmr.msra.gmra.mrb[10].mxu1 %v12730_v15  ;;  %v5791_v30 = vand.u32 4294901760, %v5790_v43 }
 0x239   :  { %11263 = vmatprep.mubr.f32.mxu1 %v12635_v10 }
 0x23a   :  { %v11898_v48 = vpack.c.bf16 %v5798_v45, %v5791_v30 }
 0x23c   :  { %11899 = vmatprep.subr.bf16.mxu1 %v11898_v48 }
 0x23d   :  { %11901 = vmatpush3.bf16.msra.mxu1 %v11898_v48 }
 0x23e   :  { %11903 = vmatprep.subr.bf16.mxu1 %v11902_v42 }
 0x240   :  { %11264 = vmatmul.mubr.f32.vlgmr.msra.gmra.mrb[10].mxu1 %v12703_v52 }
 0x241   :  { %11905 = vmatpush3.bf16.msra.mxu1 %v11902_v42  ;;  %11270 = vmatprep.mubr.f32.mxu1 %v12638_v13 }
 0x242   :  { %11907 = vmatprep.subr.bf16.mxu1 %v11894_v38 }
 0x248   :  { %11271 = vmatmul.mubr.f32.vlgmr.msra.gmra.mrb[10].mxu1 %v12713_v56 }
 0x249   :  { %11909 = vmatpush3.bf16.msra.mxu1 %v11894_v38  ;;  %11277 = vmatprep.mubr.f32.mxu1 %v12641_v16 }
 0x24a   :  { %11911 = vmatprep.subr.bf16.mxu1 %v11910_v44 }
 0x250   :  { %11278 = vmatmul.mubr.f32.vlgmr.msra.gmra.mrb[10].mxu1 %v12721_v59 }
 0x251   :  { %11913 = vmatpush3.bf16.msra.mxu1 %v11910_v44  ;;  %11284 = vmatprep.mubr.f32.mxu1 %v12635_v10 }
 0x252   :  { %11915 = vmatprep.subr.bf16.mxu1 %v11894_v38 }
 0x257   :  { %v12950_v35 = vpop.f32.mrb[0].mxu1 }
 0x258   :  { %v12952_v50 = vpop.f32.mrb[1].mxu1  ;;  %11285 = vmatmul.mubr.f32.vlgmr.msra.gmra.mrb[10].mxu1 %v12703_v52  ;;  %v3121_v27 = vmul.f32 %v12950_v35, %v12950_v35 }
 0x259   :  { %11917 = vmatpush3.bf16.msra.mxu1 %v11894_v38  ;;  %11291 = vmatprep.mubr.f32.mxu1 %v12635_v10  ;;  %v3120_v9 = vmul.f32 %v12952_v50, %v12952_v50 }
 0x25a   :  { %v11335_v46 = vpop.f32.mrb[12].mxu0  ;;  %v3123_v28 = vmul.f32 0.012345679, %v3121_v27 }
 0x25b   :  { %v6713_v47 = vand.u32 4294901760, %v11335_v46  ;;  %v6699_v49 = vpop.f32.mrb[13].mxu0  ;;  %v3122_v14 = vmul.f32 0.012345679, %v3120_v9 }
 0x25c   :  { %v6710_v51 = vand.u32 4294901760, %v6699_v49 }
 0x25d   :  { %v6805_v53 = vsub.f32 %v11335_v46, %v6713_v47 }
 0x25e   :  { %v11942_v57 = vpack.c.bf16 %v6713_v47, %v6710_v51  ;;  %v6798_v58 = vsub.f32 %v6699_v49, %v6710_v51 }
 0x25f   :  { %v6806_v54 = vand.u32 4294901760, %v6805_v53 }
 0x260   :  { %v6799_v60 = vand.u32 4294901760, %v6798_v58  ;;  %11292 = vmatmul.mubr.f32.vlgmr.msra.gmra.mrb[10].mxu1 %v12703_v52  ;;  %11943 = vmatprep.subr.bf16.mxu1 %v11942_v57  ;;  %v11950_v61 = vpack.c.bf16 %v6805_v53, %v6798_v58 }
 0x261   :  { %v6807_v62 = vsub.f32 %v6805_v53, %v6806_v54  ;;  %11945 = vmatpush3.bf16.msra.mxu1 %v11942_v57  ;;  %11340 = vmatprep.mubr.f32.mxu1 %v12647_v19 }
 0x262   :  { %v6800_v63 = vsub.f32 %v6798_v58, %v6799_v60  ;;  %v11958_v0 = vpack.c.bf16 %v6806_v54, %v6799_v60 }
 0x263   :  { %v6808_v1 = vand.u32 4294901760, %v6807_v62 }
 0x264   :  { %11341 = vmatmul.mubr.f32.vlgmr.msra.gmra.mrb[12].mxu1 %v12730_v15  ;;  %v6801_v55 = vand.u32 4294901760, %v6800_v63 }
 0x265   :  { %11347 = vmatprep.mubr.f32.mxu1 %v12635_v10 }
 0x266   :  { %v11946_v2 = vpack.c.bf16 %v6808_v1, %v6801_v55 }
 0x268   :  { %11947 = vmatprep.subr.bf16.mxu1 %v11946_v2 }
 0x269   :  { %11949 = vmatpush3.bf16.msra.mxu1 %v11946_v2 }
 0x26a   :  { %11951 = vmatprep.subr.bf16.mxu1 %v11950_v61 }
 0x26c   :  { %11348 = vmatmul.mubr.f32.vlgmr.msra.gmra.mrb[12].mxu1 %v12703_v52 }
 0x26d   :  { %11953 = vmatpush3.bf16.msra.mxu1 %v11950_v61  ;;  %11354 = vmatprep.mubr.f32.mxu1 %v12638_v13 }
 0x26e   :  { %11955 = vmatprep.subr.bf16.mxu1 %v11942_v57 }
 0x274   :  { %11355 = vmatmul.mubr.f32.vlgmr.msra.gmra.mrb[12].mxu1 %v12713_v56 }
 0x275   :  { %11957 = vmatpush3.bf16.msra.mxu1 %v11942_v57  ;;  %11361 = vmatprep.mubr.f32.mxu1 %v12641_v16 }
 0x276   :  { %11959 = vmatprep.subr.bf16.mxu1 %v11958_v0 }
 0x27c   :  { %11362 = vmatmul.mubr.f32.vlgmr.msra.gmra.mrb[12].mxu1 %v12721_v59 }
 0x27d   :  { %11961 = vmatpush3.bf16.msra.mxu1 %v11958_v0  ;;  %11368 = vmatprep.mubr.f32.mxu1 %v12635_v10 }
 0x27e   :  { %11963 = vmatprep.subr.bf16.mxu1 %v11942_v57 }
 0x283   :  { %v12966_v3 = vpop.f32.mrb[2].mxu1 }
 0x284   :  { %v12970_v4 = vmul.f32 %v12966_v3, %v12950_v35  ;;  %v12972_v5 = vpop.f32.mrb[3].mxu1  ;;  %11369 = vmatmul.mubr.f32.vlgmr.msra.gmra.mrb[12].mxu1 %v12703_v52  ;;  %v4141_v53 = vmul.f32 %v12966_v3, %v12966_v3 }
 0x285   :  { %v12977_v7 = vmul.f32 %v12972_v5, %v12952_v50  ;;  %11965 = vmatpush3.bf16.msra.mxu1 %v11942_v57  ;;  %11375 = vmatprep.mubr.f32.mxu1 %v12635_v10  ;;  %v4140_v57 = vmul.f32 %v12972_v5, %v12972_v5 }
 0x286   :  { %v11419_v8 = vpop.f32.mrb[14].mxu0  ;;  %v4143_v58 = vmul.f32 0.012345679, %v4141_v53  ;;  %v5163_v27 = vmul.f32 0.012345679, %v12970_v4 }
 0x287   :  { %v7725_v11 = vand.u32 4294901760, %v11419_v8  ;;  %v7711_v31 = vpop.f32.mrb[15].mxu0  ;;  %v4142_v54 = vmul.f32 0.012345679, %v4140_v57 }
 0x288   :  { %v7722_v32 = vand.u32 4294901760, %v7711_v31 }
 0x289   :  { %v7817_v6 = vsub.f32 %v11419_v8, %v7725_v11 }
 0x28a   :  { %v11990_v17 = vpack.c.bf16 %v7725_v11, %v7722_v32  ;;  %v7810_v33 = vsub.f32 %v7711_v31, %v7722_v32 }
 0x28b   :  { %v7818_v18 = vand.u32 4294901760, %v7817_v6 }
 0x28c   :  { %v7811_v20 = vand.u32 4294901760, %v7810_v33  ;;  %11376 = vmatmul.mubr.f32.vlgmr.msra.gmra.mrb[12].mxu1 %v12703_v52  ;;  %11991 = vmatprep.subr.bf16.mxu1 %v11990_v17  ;;  %v11998_v21 = vpack.c.bf16 %v7817_v6, %v7810_v33 }
 0x28d   :  { %v7819_v22 = vsub.f32 %v7817_v6, %v7818_v18  ;;  %11993 = vmatpush3.bf16.msra.mxu1 %v11990_v17  ;;  %11424 = vmatprep.mubr.f32.mxu1 %v12647_v19 }
 0x28e   :  { %v7812_v23 = vsub.f32 %v7810_v33, %v7811_v20  ;;  %v12006_v24 = vpack.c.bf16 %v7818_v18, %v7811_v20 }
 0x28f   :  { %v7820_v25 = vand.u32 4294901760, %v7819_v22 }
 0x290   :  { %11425 = vmatmul.mubr.f32.vlgmr.msra.gmra.mrb[14].mxu1 %v12730_v15  ;;  %v7813_v26 = vand.u32 4294901760, %v7812_v23 }
 0x291   :  { %11431 = vmatprep.mubr.f32.mxu1 %v12635_v10 }
 0x292   :  { %v11994_v12 = vpack.c.bf16 %v7820_v25, %v7813_v26 }
 0x294   :  { %11995 = vmatprep.subr.bf16.mxu1 %v11994_v12 }
 0x295   :  { %11997 = vmatpush3.bf16.msra.mxu1 %v11994_v12 }
 0x296   :  { %11999 = vmatprep.subr.bf16.mxu1 %v11998_v21 }
 0x298   :  { %11432 = vmatmul.mubr.f32.vlgmr.msra.gmra.mrb[14].mxu1 %v12703_v52 }
 0x299   :  { %12001 = vmatpush3.bf16.msra.mxu1 %v11998_v21  ;;  %11438 = vmatprep.mubr.f32.mxu1 %v12638_v13 }
 0x29a   :  { %12003 = vmatprep.subr.bf16.mxu1 %v11990_v17 }
 0x2a0   :  { %11439 = vmatmul.mubr.f32.vlgmr.msra.gmra.mrb[14].mxu1 %v12713_v56 }
 0x2a1   :  { %12005 = vmatpush3.bf16.msra.mxu1 %v11990_v17  ;;  %11445 = vmatprep.mubr.f32.mxu1 %v12641_v16 }
 0x2a2   :  { %12007 = vmatprep.subr.bf16.mxu1 %v12006_v24 }
 0x2a8   :  { %11446 = vmatmul.mubr.f32.vlgmr.msra.gmra.mrb[14].mxu1 %v12721_v59 }
 0x2a9   :  { %12009 = vmatpush3.bf16.msra.mxu1 %v12006_v24  ;;  %11452 = vmatprep.mubr.f32.mxu1 %v12635_v10 }
 0x2aa   :  { %12011 = vmatprep.subr.bf16.mxu1 %v11990_v17 }
 0x2af   :  { %v11041_v36 = vpop.f32.mrb[4].mxu1 }
 0x2b0   :  { %v3125_v29 = vsub.f32 %v11041_v36, %v3123_v28  ;;  %v3110_v37 = vpop.f32.mrb[5].mxu1  ;;  %11453 = vmatmul.mubr.f32.vlgmr.msra.gmra.mrb[14].mxu1 %v12703_v52 }
 0x2b1   :  { %v3124_v38 = vsub.f32 %v3110_v37, %v3122_v14  ;;  %12013 = vmatpush3.bf16.msra.mxu1 %v11990_v17  ;;  %11459 = vmatprep.mubr.f32.mxu1 %v12635_v10 }
 0x2b2   :  { %v11503_v39 = vpop.f32.mrb[16].mxu0  ;;  %v3127_v0 = vmax.f32 %v3125_v29, 0.0 }
 0x2b3   :  { %v8745_v40 = vand.u32 4294901760, %v11503_v39  ;;  %v8731_v41 = vpop.f32.mrb[17].mxu0  ;;  %v3126_v2 = vmax.f32 %v3124_v38, 0.0 }
 0x2b4   :  { %v8742_v42 = vand.u32 4294901760, %v8731_v41 }
 0x2b5   :  { %v8837_v34 = vsub.f32 %v11503_v39, %v8745_v40 }
 0x2b6   :  { %v12038_v43 = vpack.c.bf16 %v8745_v40, %v8742_v42  ;;  %v8830_v44 = vsub.f32 %v8731_v41, %v8742_v42 }
 0x2b7   :  { %v8838_v45 = vand.u32 4294901760, %v8837_v34 }
 0x2b8   :  { %v8831_v30 = vand.u32 4294901760, %v8830_v44  ;;  %11460 = vmatmul.mubr.f32.vlgmr.msra.gmra.mrb[14].mxu1 %v12703_v52  ;;  %12039 = vmatprep.subr.bf16.mxu1 %v12038_v43  ;;  %v12046_v48 = vpack.c.bf16 %v8837_v34, %v8830_v44 }
 0x2b9   :  { %v8839_v35 = vsub.f32 %v8837_v34, %v8838_v45  ;;  %12041 = vmatpush3.bf16.msra.mxu1 %v12038_v43  ;;  %11508 = vmatprep.mubr.f32.mxu1 %v12647_v19 }
 0x2ba   :  { %v8832_v50 = vsub.f32 %v8830_v44, %v8831_v30  ;;  %v12054_v46 = vpack.c.bf16 %v8838_v45, %v8831_v30 }
 0x2bb   :  { %v8840_v47 = vand.u32 4294901760, %v8839_v35 }
 0x2bc   :  { %11509 = vmatmul.mubr.f32.vlgmr.msra.gmra.mrb[16].mxu1 %v12730_v15  ;;  %v8833_v49 = vand.u32 4294901760, %v8832_v50 }
 0x2bd   :  { %11515 = vmatprep.mubr.f32.mxu1 %v12635_v10 }
 0x2be   :  { %v12042_v51 = vpack.c.bf16 %v8840_v47, %v8833_v49 }
 0x2c0   :  { %12043 = vmatprep.subr.bf16.mxu1 %v12042_v51 }
 0x2c1   :  { %12045 = vmatpush3.bf16.msra.mxu1 %v12042_v51 }
 0x2c2   :  { %12047 = vmatprep.subr.bf16.mxu1 %v12046_v48 }
 0x2c4   :  { %11516 = vmatmul.mubr.f32.vlgmr.msra.gmra.mrb[16].mxu1 %v12703_v52 }
 0x2c5   :  { %12049 = vmatpush3.bf16.msra.mxu1 %v12046_v48  ;;  %11522 = vmatprep.mubr.f32.mxu1 %v12638_v13 }
 0x2c6   :  { %12051 = vmatprep.subr.bf16.mxu1 %v12038_v43 }
 0x2cc   :  { %11523 = vmatmul.mubr.f32.vlgmr.msra.gmra.mrb[16].mxu1 %v12713_v56 }
 0x2cd   :  { %12053 = vmatpush3.bf16.msra.mxu1 %v12038_v43  ;;  %11529 = vmatprep.mubr.f32.mxu1 %v12641_v16 }
 0x2ce   :  { %12055 = vmatprep.subr.bf16.mxu1 %v12054_v46 }
 0x2d4   :  { %11530 = vmatmul.mubr.f32.vlgmr.msra.gmra.mrb[16].mxu1 %v12721_v59 }
 0x2d5   :  { %12057 = vmatpush3.bf16.msra.mxu1 %v12054_v46  ;;  %11536 = vmatprep.mubr.f32.mxu1 %v12635_v10 }
 0x2d6   :  { %12059 = vmatprep.subr.bf16.mxu1 %v12038_v43 }
 0x2db   :  { %v11125_v60 = vpop.f32.mrb[6].mxu1 }
 0x2dc   :  { %v4145_v61 = vsub.f32 %v11125_v60, %v4143_v58  ;;  %v4130_v62 = vpop.f32.mrb[7].mxu1  ;;  %11537 = vmatmul.mubr.f32.vlgmr.msra.gmra.mrb[16].mxu1 %v12703_v52 }
 0x2dd   :  { %v4144_v63 = vsub.f32 %v4130_v62, %v4142_v54  ;;  %12061 = vmatpush3.bf16.msra.mxu1 %v12038_v43  ;;  %11543 = vmatprep.mubr.f32.mxu1 %v12635_v10 }
 0x2de   :  { %v4147_v1 = vmax.f32 %v4145_v61, 0.0  ;;  %v11587_v55 = vpop.f32.mrb[18].mxu0 }
 0x2df   :  { %v4146_v3 = vmax.f32 %v4144_v63, 0.0  ;;  %v9765_v8 = vand.u32 4294901760, %v11587_v55  ;;  %v9751_v11 = vpop.f32.mrb[19].mxu0 }
 0x2e0   :  { %v5167_v31 = vmul.f32 %v4147_v1, %v3127_v0  ;;  %v9762_v5 = vand.u32 4294901760, %v9751_v11 }
 0x2e1   :  { %v5166_v32 = vmul.f32 %v4146_v3, %v3126_v2  ;;  %v9857_v6 = vsub.f32 %v11587_v55, %v9765_v8 }
 0x2e2   :  { %v12086_v17 = vpack.c.bf16 %v9765_v8, %v9762_v5  ;;  %v9850_v33 = vsub.f32 %v9751_v11, %v9762_v5 }
 0x2e3   :  { %v9858_v18 = vand.u32 4294901760, %v9857_v6 }
 0x2e4   :  { %v9851_v20 = vand.u32 4294901760, %v9850_v33  ;;  %11544 = vmatmul.mubr.f32.vlgmr.msra.gmra.mrb[16].mxu1 %v12703_v52  ;;  %12087 = vmatprep.subr.bf16.mxu1 %v12086_v17  ;;  %v12094_v21 = vpack.c.bf16 %v9857_v6, %v9850_v33 }
 0x2e5   :  { %v9859_v22 = vsub.f32 %v9857_v6, %v9858_v18  ;;  %12089 = vmatpush3.bf16.msra.mxu1 %v12086_v17  ;;  %11592 = vmatprep.mubr.f32.mxu1 %v12647_v19  ;;  %v5169_v19 = vadd.f32 1e-05, %v5167_v31 }
 0x2e6   :  { %v9852_v23 = vsub.f32 %v9850_v33, %v9851_v20  ;;  %v12102_v24 = vpack.c.bf16 %v9858_v18, %v9851_v20 }
 0x2e7   :  { %v9860_v25 = vand.u32 4294901760, %v9859_v22  ;;  %12319 = vrcp.f32 %v5169_v19 }
 0x2e8   :  { %v9853_v26 = vand.u32 4294901760, %v9852_v23  ;;  %11593 = vmatmul.mubr.f32.vlgmr.msra.gmra.mrb[18].mxu1 %v12730_v15  ;;  %v5168_v15 = vadd.f32 1e-05, %v5166_v32 }
 0x2e9   :  { %11599 = vmatprep.mubr.f32.mxu1 %v12635_v10 }
 0x2ea   :  { %v12090_v12 = vpack.c.bf16 %v9860_v25, %v9853_v26  ;;  %12321 = vrcp.f32 %v5168_v15 }
 0x2ec   :  { %12091 = vmatprep.subr.bf16.mxu1 %v12090_v12 }
 0x2ed   :  { %12093 = vmatpush3.bf16.msra.mxu1 %v12090_v12 }
 0x2ee   :  { %12095 = vmatprep.subr.bf16.mxu1 %v12094_v21 }
 0x2f0   :  { %11600 = vmatmul.mubr.f32.vlgmr.msra.gmra.mrb[18].mxu1 %v12703_v52 }
 0x2f1   :  { %12097 = vmatpush3.bf16.msra.mxu1 %v12094_v21  ;;  %11606 = vmatprep.mubr.f32.mxu1 %v12638_v13  ;;  %v5162_v13 = vmul.f32 0.012345679, %v12977_v7  ;;  %v12320_v14 = vpop.eup %12319 }
 0x2f2   :  { %12099 = vmatprep.subr.bf16.mxu1 %v12086_v17 }
 0x2f4   :  { %v12322_v29 = vpop.eup %12321 }
 0x2f8   :  { %11607 = vmatmul.mubr.f32.vlgmr.msra.gmra.mrb[18].mxu1 %v12713_v56 }
 0x2f9   :  { %12101 = vmatpush3.bf16.msra.mxu1 %v12086_v17  ;;  %11613 = vmatprep.mubr.f32.mxu1 %v12641_v16 }
 0x2fa   :  { %12103 = vmatprep.subr.bf16.mxu1 %v12102_v24 }
 0x300   :  { %11614 = vmatmul.mubr.f32.vlgmr.msra.gmra.mrb[18].mxu1 %v12721_v59 }
 0x301   :  { %12105 = vmatpush3.bf16.msra.mxu1 %v12102_v24  ;;  %11620 = vmatprep.mubr.f32.mxu1 %v12635_v10 }
 0x302   :  { %12107 = vmatprep.subr.bf16.mxu1 %v12086_v17 }
 0x307   :  { %v11209_v9 = vpop.f32.mrb[8].mxu1 }
 0x308   :  { %v5165_v56 = vsub.f32 %v11209_v9, %v5163_v27  ;;  %v5150_v28 = vpop.f32.mrb[9].mxu1  ;;  %11621 = vmatmul.mubr.f32.vlgmr.msra.gmra.mrb[18].mxu1 %v12703_v52 }
 0x309   :  { %v5164_v16 = vsub.f32 %v5150_v28, %v5162_v13  ;;  %12109 = vmatpush3.bf16.msra.mxu1 %v12086_v17  ;;  %11627 = vmatprep.mubr.f32.mxu1 %v12635_v10 }
 0x30a   :  { %v5171_v59 = vmul.f32 %v5165_v56, %v5165_v56 }
 0x30b   :  { %v5170_v36 = vmul.f32 %v5164_v16, %v5164_v16 }
 0x30c   :  { %v5175_v37 = vmul.f32 %v12320_v14, %v5171_v59 }
 0x30d   :  { %v5174_v38 = vmul.f32 %v12322_v29, %v5170_v36 }
 0x30e   :  { %v5177_v39 = vsel %vm81_vm0, %v5175_v37, 0.0 }
 0x30f   :  { %v5176_v4 = vsel %vm81_vm0, %v5174_v38, 0.0 }
 0x310   :  { %v5178_v7 = vadd.f32 %v5177_v39, %v5176_v4  ;;  %11628 = vmatmul.mubr.f32.vlgmr.msra.gmra.mrb[18].mxu1 %v12703_v52 }
 0x312   :  { %v5179_v40 = vrot.slane %v5178_v7, 4 }
 0x314   :  { %v5180_v41 = vadd.f32 %v5179_v40, %v5178_v7 }
 0x316   :  { %v5181_v42 = vrot.slane %v5180_v41, 2 }
 0x318   :  { %v5182_v34 = vadd.f32 %v5181_v42, %v5180_v41 }
 0x31a   :  { %v5183_v43 = vrot.slane %v5182_v34, 1 }
 0x31c   :  { %v5184_v10 = vadd.f32 %v5183_v43, %v5182_v34 }
 0x31e   :  { %10289 = vst.msk [vmem:[#allocation10] sm:$0x1] %vm10288_vm1, %v5184_v10 }
 0x333   :  { %v11293_v44 = vpop.f32.mrb[10].mxu1 }
 0x334   :  { %v6191_v45 = vpop.f32.mrb[11].mxu1  ;;  %v8224_v46 = vmul.f32 %v11293_v44, %v11293_v44 }
 0x335   :  { %v8223_v47 = vmul.f32 %v6191_v45, %v6191_v45 }
 0x336   :  { %v8226_v49 = vmul.f32 0.012345679, %v8224_v46 }
 0x337   :  { %v8225_v51 = vmul.f32 0.012345679, %v8223_v47 }
 0x35f   :  { %v11377_v30 = vpop.f32.mrb[12].mxu1 }
 0x360   :  { %v10264_v48 = vmul.f32 %v11377_v30, %v11293_v44  ;;  %v7201_v35 = vpop.f32.mrb[13].mxu1  ;;  %v9244_v54 = vmul.f32 %v11377_v30, %v11377_v30 }
 0x361   :  { %v10263_v50 = vmul.f32 %v7201_v35, %v6191_v45  ;;  %v9243_v60 = vmul.f32 %v7201_v35, %v7201_v35 }
 0x362   :  { %v9246_v61 = vmul.f32 0.012345679, %v9244_v54  ;;  %v10266_v17 = vmul.f32 0.012345679, %v10264_v48 }
 0x363   :  { %v9245_v62 = vmul.f32 0.012345679, %v9243_v60  ;;  %v10265_v33 = vmul.f32 0.012345679, %v10263_v50 }
 0x38b   :  { %v11461_v52 = vpop.f32.mrb[14].mxu1 }
 0x38c   :  { %v8228_v53 = vsub.f32 %v11461_v52, %v8226_v49  ;;  %v8213_v57 = vpop.f32.mrb[15].mxu1 }
 0x38d   :  { %v8227_v58 = vsub.f32 %v8213_v57, %v8225_v51 }
 0x38e   :  { %v8230_v2 = vmax.f32 %v8228_v53, 0.0 }
 0x38f   :  { %v8229_v8 = vmax.f32 %v8227_v58, 0.0 }
 0x3b7   :  { %v11545_v63 = vpop.f32.mrb[16].mxu1 }
 0x3b8   :  { %v9248_v0 = vsub.f32 %v11545_v63, %v9246_v61  ;;  %v9233_v1 = vpop.f32.mrb[17].mxu1 }
 0x3b9   :  { %v9247_v55 = vsub.f32 %v9233_v1, %v9245_v62 }
 0x3ba   :  { %v9250_v3 = vmax.f32 %v9248_v0, 0.0 }
 0x3bb   :  { %v9249_v11 = vmax.f32 %v9247_v55, 0.0 }
 0x3bc   :  { %v10270_v31 = vmul.f32 %v9250_v3, %v8230_v2 }
 0x3bd   :  { %v10269_v5 = vmul.f32 %v9249_v11, %v8229_v8 }
 0x3be   :  { %v10272_v32 = vadd.f32 1e-05, %v10270_v31 }
 0x3bf   :  { %v10271_v6 = vadd.f32 1e-05, %v10269_v5 }
 0x3c0   :  { %12323 = vrcp.f32 %v10272_v32 }
 0x3c1   :  { %12325 = vrcp.f32 %v10271_v6 }
 0x3ca   :  { %v12324_v24 = vpop.eup %12323 }
 0x3cb   :  { %v12326_v26 = vpop.eup %12325 }
 0x3e3   :  { %v11629_v18 = vpop.f32.mrb[18].mxu1 }
 0x3e4   :  { %v10268_v20 = vsub.f32 %v11629_v18, %v10266_v17  ;;  %v10253_v21 = vpop.f32.mrb[19].mxu1 }
 0x3e5   :  { %v10267_v22 = vsub.f32 %v10253_v21, %v10265_v33 }
 0x3e6   :  { %v10274_v23 = vmul.f32 %v10268_v20, %v10268_v20 }
 0x3e7   :  { %v10273_v25 = vmul.f32 %v10267_v22, %v10267_v22 }
 0x3e8   :  { %v10278_v12 = vmul.f32 %v12324_v24, %v10274_v23 }
 0x3e9   :  { %v10277_v19 = vmul.f32 %v12326_v26, %v10273_v25 }
 0x3ea   :  { %v10280_v15 = vsel %vm81_vm0, %v10278_v12, 0.0 }
 0x3eb   :  { %v10279_v27 = vsel %vm81_vm0, %v10277_v19, 0.0 }
 0x3ec   :  { %v10281_v13 = vadd.f32 %v10280_v15, %v10279_v27 }
 0x3ee   :  { %v10282_v9 = vrot.slane %v10281_v13, 4 }
 0x3f0   :  { %v10283_v56 = vadd.f32 %v10282_v9, %v10281_v13 }
 0x3f2   :  { %v10284_v28 = vrot.slane %v10283_v56, 2 }
 0x3f4   :  { %v10285_v16 = vadd.f32 %v10284_v28, %v10283_v56 }
 0x3f6   :  { %v10286_v59 = vrot.slane %v10285_v16, 1 }
 0x3f8   :  { %v10287_v14 = vadd.f32 %v10286_v59, %v10285_v16 }
 0x3fa   :  { %10290 = vst.msk [vmem:[#allocation10 + $0x1] sm:$0x1] %vm10288_vm1, %v10287_v14 }
 0x3fb   :  { %12426 = shalt.err (!%p12423_p8)
}
 0x3fc   :  { %s12427_s13 = scalar_lea.hbm %s13049_s4, 32 }
 0x3fd   :  { %p12428_p9 = scmp.ne.s32.totalorder %s13049_s4, %s12427_s13  ;;  %p12431_p10 = scmp.lt.u32.totalorder %s12427_s13, %s13049_s4 }
 0x3ff   :  { %p12433_p11 = pnand %p12431_p10, %p12428_p9 }
 0x401   :  { %12436 = shalt.err (!%p12433_p11)
}
 0x402   :  { %s12452_s19 = smov 16   ;;  %s12453_s20 = smov 1  }
 0x403   :  { %10302 = dma.vmem_to_hbm [thread:$0]  %s10297_s27, 32, %s13049_s4, [#allocation4], %s12452_s19, %s12452_s19, %s12453_s20  }
 0x404   :  { %12443 = dma.done.wait [#allocation4], 32  }
 0x405   :  { %12444 = vsyncadd [#allocation4], 4294967264 }
 0x406   :  { %10306 = vsyncpa [#allocation3], 1 }
 0x407   :  { %10307 = vsyncpa [#allocation6], 1 }
 0x408   :  { %10308 = vsyncpa [#allocation9], 1 }
 0x409   :  { %10309 = vsyncpa [#allocation4], 1 }

</bundles_post_ra>
